<compile_context>
chip_gen: v7x
topology: tpu7x:2x2x1
jax: 0.10.0
libtpu: 0.0.40
codegen_flags: <defaults>
</compile_context>

<pallas_src>
import math
from functools import partial

import jax
import jax.numpy as jnp
from jax.experimental import pallas as pl
from jax.experimental.pallas import tpu as pltpu


_LN_EPS = 1e-12
_MIB = 1024 * 1024
_VMEM_CAP_CACHE = None


def _tile(dim, target):
    """Largest tile <= target that divides dim."""
    if dim <= target:
        return dim
    t = target
    while dim % t != 0:
        t //= 2
    return t


def _vmem_capacity_bytes():
    """Per-TensorCore VMEM capacity (v5e/v6e: 128 MiB, v7x: 64 MiB)."""
    global _VMEM_CAP_CACHE
    if _VMEM_CAP_CACHE is None:
        cap = 64 * _MIB  # safe fallback for every generation
        try:
            info = pltpu.get_tpu_info()
            for attr in ("vmem_capacity_bytes", "vmem_size_bytes", "vmem_bytes"):
                v = getattr(info, attr, None)
                if v:
                    cap = int(v)
                    break
        except Exception:
            pass
        _VMEM_CAP_CACHE = cap
    return _VMEM_CAP_CACHE


def _live_budget():
    # Live, double-buffer-counted block bytes we allow per kernel:
    # ~35 MiB on v7x (64 MiB/TC), ~70 MiB on v5e/v6e (128 MiB/TC).
    return int(_vmem_capacity_bytes() * 0.55)


def _compiler_params(dim_sem, live_bytes):
    cap = _vmem_capacity_bytes()
    limit = int(min(max(32 * _MIB, 2 * live_bytes), int(cap * 0.85)))
    return pltpu.CompilerParams(dimension_semantics=dim_sem,
                                vmem_limit_bytes=limit)


def _gelu(x):
    # TODO(synk): HuggingFace BERT default is the exact erf GELU; tanh approx used here.
    c = math.sqrt(2.0 / math.pi)
    return 0.5 * x * (1.0 + jnp.tanh(c * (x + 0.044715 * x * x * x)))


# ------------------------------------------------------------------ kernels --
def pallas_dense(x, w, b, activation=None, tm_target=512, tn_target=1536):
    """act(x @ w + b); x:[M,K] bf16, w:[K,N] bf16, b:[N] f32 -> [M,N] bf16.

    Full-K contraction preferred: 2-D all-parallel grid, no accumulator scratch,
    no init/finalize phases.  K is only split if the blocks overflow the VMEM
    budget (generation-aware via pltpu.get_tpu_info)."""
    M, K = x.shape
    N = w.shape[1]
    budget = _live_budget()
    tm, tn, tk = _tile(M, tm_target), _tile(N, tn_target), K

    def live(tm_, tn_, tk_):
        blocks = 2 * 2 * (tm_ * tk_ + tk_ * tn_ + tm_ * tn_) + 2 * 4 * tn_
        if tk_ < K:
            blocks += 4 * tm_ * tn_              # f32 accumulator scratch
        return blocks

    while live(tm, tn, tk) > budget:
        if tn > 512:
            tn = _tile(N, tn // 2)
        elif tm > 256:
            tm = _tile(M, tm // 2)
        elif tk > 768:
            tk = _tile(K, tk // 2)
        elif tn > 128:
            tn = _tile(N, tn // 2)
        elif tm > 8:
            tm = _tile(M, tm // 2)
        elif tk > 128:
            tk = _tile(K, tk // 2)
        else:
            break

    nk = K // tk
    blk_bytes = live(tm, tn, tk)
    cost = pl.CostEstimate(
        flops=2 * M * N * K,
        transcendentals=M * N if activation == "gelu" else 0,
        bytes_accessed=2 * (M * K * (N // tn) + K * N * (M // tm) + M * N) + 4 * N)

    if nk == 1:
        def kernel(x_ref, w_ref, b_ref, o_ref):
            y = jnp.dot(x_ref[...], w_ref[...],
                        preferred_element_type=jnp.float32) + b_ref[...]
            if activation == "gelu":
                y = _gelu(y)
            o_ref[...] = y.astype(o_ref.dtype)

        return pl.pallas_call(
            kernel,
            grid=(M // tm, N // tn),
            in_specs=[pl.BlockSpec((tm, K), lambda i, j: (i, 0)),
                      pl.BlockSpec((K, tn), lambda i, j: (0, j)),
                      pl.BlockSpec((1, tn), lambda i, j: (0, j))],
            out_specs=pl.BlockSpec((tm, tn), lambda i, j: (i, j)),
            out_shape=jax.ShapeDtypeStruct((M, N), jnp.bfloat16),
            compiler_params=_compiler_params(("parallel", "parallel"), blk_bytes),
            cost_estimate=cost,
        )(x, w, b.reshape(1, N))

    def kernel(x_ref, w_ref, b_ref, o_ref, acc_ref):
        @pl.when(pl.program_id(2) == 0)
        def _():
            acc_ref[...] = jnp.zeros_like(acc_ref)

        acc_ref[...] += jnp.dot(x_ref[...], w_ref[...],
                                preferred_element_type=jnp.float32)

        @pl.when(pl.program_id(2) == pl.num_programs(2) - 1)
        def _():
            y = acc_ref[...] + b_ref[...]
            if activation == "gelu":
                y = _gelu(y)
            o_ref[...] = y.astype(o_ref.dtype)

    return pl.pallas_call(
        kernel,
        grid=(M // tm, N // tn, nk),
        in_specs=[pl.BlockSpec((tm, tk), lambda i, j, k: (i, k)),
                  pl.BlockSpec((tk, tn), lambda i, j, k: (k, j)),
                  pl.BlockSpec((1, tn), lambda i, j, k: (0, j))],
        out_specs=pl.BlockSpec((tm, tn), lambda i, j, k: (i, j)),
        out_shape=jax.ShapeDtypeStruct((M, N), jnp.bfloat16),
        scratch_shapes=[pltpu.VMEM((tm, tn), jnp.float32)],
        compiler_params=_compiler_params(("parallel", "parallel", "arbitrary"),
                                         blk_bytes),
        cost_estimate=cost,
    )(x, w, b.reshape(1, N))


def pallas_dense_res_ln(x, w, b, res, gamma, beta, tm_target=512):
    """LayerNorm(x @ w + b + res); x:[M,K], w:[K,N], res:[M,N] -> [M,N] bf16.

    N (= hidden) stays whole in one block so the LayerNorm over the last dim
    fuses into the matmul epilogue (saves activation HBM round-trips).
    Full-K contraction preferred; split-K path only as a VMEM fallback."""
    M, K = x.shape
    N = w.shape[1]
    budget = _live_budget()
    tm, tk = _tile(M, tm_target), K

    def live(tm_, tk_):
        blocks = 2 * 2 * (tm_ * tk_ + tk_ * N + 2 * tm_ * N) + 2 * 4 * 3 * N
        if tk_ < K:
            blocks += 4 * tm_ * N
        return blocks

    while live(tm, tk) > budget:
        if tm > 256:
            tm = _tile(M, tm // 2)
        elif tk > 768:
            tk = _tile(K, tk // 2)
        elif tm > 8:
            tm = _tile(M, tm // 2)
        elif tk > 128:
            tk = _tile(K, tk // 2)
        else:
            break

    nk = K // tk
    blk_bytes = live(tm, tk)
    cost = pl.CostEstimate(
        flops=2 * M * N * K + 8 * M * N,
        transcendentals=M,
        bytes_accessed=2 * (M * K + K * N * (M // tm) + 2 * M * N) + 12 * N)

    def _ln_epilogue(h, g_ref, be_ref, o_ref):
        mu = jnp.mean(h, axis=-1, keepdims=True)
        var = jnp.mean((h - mu) ** 2, axis=-1, keepdims=True)
        o_ref[...] = ((h - mu) * jax.lax.rsqrt(var + _LN_EPS) * g_ref[...]
                      + be_ref[...]).astype(o_ref.dtype)

    if nk == 1:
        def kernel(x_ref, w_ref, b_ref, r_ref, g_ref, be_ref, o_ref):
            h = jnp.dot(x_ref[...], w_ref[...],
                        preferred_element_type=jnp.float32)
            h = h + b_ref[...] + r_ref[...].astype(jnp.float32)
            _ln_epilogue(h, g_ref, be_ref, o_ref)

        return pl.pallas_call(
            kernel,
            grid=(M // tm,),
            in_specs=[pl.BlockSpec((tm, K), lambda i: (i, 0)),
                      pl.BlockSpec((K, N), lambda i: (0, 0)),
                      pl.BlockSpec((1, N), lambda i: (0, 0)),
                      pl.BlockSpec((tm, N), lambda i: (i, 0)),
                      pl.BlockSpec((1, N), lambda i: (0, 0)),
                      pl.BlockSpec((1, N), lambda i: (0, 0))],
            out_specs=pl.BlockSpec((tm, N), lambda i: (i, 0)),
            out_shape=jax.ShapeDtypeStruct((M, N), jnp.bfloat16),
            compiler_params=_compiler_params(("parallel",), blk_bytes),
            cost_estimate=cost,
        )(x, w, b.reshape(1, N), res, gamma.reshape(1, N), beta.reshape(1, N))

    def kernel(x_ref, w_ref, b_ref, r_ref, g_ref, be_ref, o_ref, acc_ref):
        @pl.when(pl.program_id(1) == 0)
        def _():
            acc_ref[...] = jnp.zeros_like(acc_ref)

        acc_ref[...] += jnp.dot(x_ref[...], w_ref[...],
                                preferred_element_type=jnp.float32)

        @pl.when(pl.program_id(1) == pl.num_programs(1) - 1)
        def _():
            h = acc_ref[...] + b_ref[...] + r_ref[...].astype(jnp.float32)
            _ln_epilogue(h, g_ref, be_ref, o_ref)

    return pl.pallas_call(
        kernel,
        grid=(M // tm, nk),
        in_specs=[pl.BlockSpec((tm, tk), lambda i, k: (i, k)),
                  pl.BlockSpec((tk, N), lambda i, k: (k, 0)),
                  pl.BlockSpec((1, N), lambda i, k: (0, 0)),
                  pl.BlockSpec((tm, N), lambda i, k: (i, 0)),
                  pl.BlockSpec((1, N), lambda i, k: (0, 0)),
                  pl.BlockSpec((1, N), lambda i, k: (0, 0))],
        out_specs=pl.BlockSpec((tm, N), lambda i, k: (i, 0)),
        out_shape=jax.ShapeDtypeStruct((M, N), jnp.bfloat16),
        scratch_shapes=[pltpu.VMEM((tm, N), jnp.float32)],
        compiler_params=_compiler_params(("parallel", "arbitrary"), blk_bytes),
        cost_estimate=cost,
    )(x, w, b.reshape(1, N), res, gamma.reshape(1, N), beta.reshape(1, N))


def pallas_layernorm(x, gamma, beta, tm_target=512):
    """LayerNorm over last dim (no residual); x:[M,H] f32 -> [M,H] bf16."""
    M, H = x.shape
    tm = _tile(M, tm_target)

    def kernel(x_ref, g_ref, b_ref, o_ref):
        h = x_ref[...].astype(jnp.float32)
        mu = jnp.mean(h, axis=-1, keepdims=True)
        var = jnp.mean((h - mu) ** 2, axis=-1, keepdims=True)
        o_ref[...] = ((h - mu) * jax.lax.rsqrt(var + _LN_EPS) * g_ref[...]
                      + b_ref[...]).astype(o_ref.dtype)

    return pl.pallas_call(
        kernel,
        grid=(M // tm,),
        in_specs=[pl.BlockSpec((tm, H), lambda i: (i, 0)),
                  pl.BlockSpec((1, H), lambda i: (0, 0)),
                  pl.BlockSpec((1, H), lambda i: (0, 0))],
        out_specs=pl.BlockSpec((tm, H), lambda i: (i, 0)),
        out_shape=jax.ShapeDtypeStruct((M, H), jnp.bfloat16),
        compiler_params=_compiler_params(("parallel",), 8 * tm * H),
    )(x, gamma.reshape(1, H), beta.reshape(1, H))


def pallas_flash_attention(qkv, n_heads, tq_target=512, tk_target=512):
    """Multi-head self-attention from a fused [B, S, 3H] QKV tensor.

    Flash-style: grid (B, head_group, q_tile, kv_tile) with online-softmax
    scratch, so the [S,S] score matrix is never materialized.  Heads are
    grouped into 128-lane blocks that live on the grid, so Q/K/V tiles and the
    output store are lane-dense (one unmasked (tq, 128) store per tile) and the
    per-grid-step unroll is at most 2 heads regardless of n_heads."""
    B, S, H3 = qkv.shape
    H = H3 // 3
    hd = H // n_heads
    scale = 1.0 / math.sqrt(hd)

    gw = hd if hd >= 128 else 128            # lane width of one head group
    assert gw % hd == 0 and H % gw == 0
    hpg = gw // hd                           # heads per group (<= 2 for BERT)
    n_groups = H // gw

    budget = _live_budget()
    tq, tk = _tile(S, tq_target), _tile(S, tk_target)

    def live(tq_, tk_):
        return (2 * 2 * (2 * tq_ * gw + 2 * tk_ * gw)       # Q/out + K/V (dbl-buffered)
                + 4 * (tq_ * gw + tq_ * tk_ + 2 * hpg * tq_ * 128))

    while live(tq, tk) > budget:
        if tk > 128:
            tk = _tile(S, tk // 2)
        elif tq > 128:
            tq = _tile(S, tq // 2)
        else:
            break

    def kernel(q_ref, k_ref, v_ref, o_ref, m_sc, l_sc, acc_sc):
        @pl.when(pl.program_id(3) == 0)
        def _():
            m_sc[...] = jnp.full_like(m_sc, -1e30)
            l_sc[...] = jnp.zeros_like(l_sc)
            acc_sc[...] = jnp.zeros_like(acc_sc)

        # TODO(synk): real BERT applies an attention (padding) mask here.
        for h in range(hpg):
            sl = slice(h * hd, (h + 1) * hd)
            qh = q_ref[0, :, sl] * scale                        # scale folded into Q
            kh = k_ref[0, :, sl]
            vh = v_ref[0, :, sl]
            s = jax.lax.dot_general(
                qh, kh, (((1,), (1,)), ((), ())),
                preferred_element_type=jnp.float32)             # (tq, tk) f32
            m_prev = m_sc[h]
            m_new = jnp.maximum(m_prev, jnp.max(s, axis=-1, keepdims=True))
            alpha = jnp.exp(m_prev - m_new)
            p = jnp.exp(s - m_new)                              # f32 (v5e-safe)
            l_sc[h] = alpha * l_sc[h] + jnp.sum(p, axis=-1, keepdims=True)
            acc_sc[:, sl] = alpha * acc_sc[:, sl] + jnp.dot(
                p.astype(vh.dtype), vh, preferred_element_type=jnp.float32)
            m_sc[h] = m_new

        @pl.when(pl.program_id(3) == pl.num_programs(3) - 1)
        def _():
            cols = [acc_sc[:, h * hd:(h + 1) * hd]
                    * pl.reciprocal(l_sc[h], approx=True) for h in range(hpg)]
            out = cols[0] if hpg == 1 else jnp.concatenate(cols, axis=-1)
            o_ref[0] = out.astype(o_ref.dtype)                  # single lane-dense store

    blk_bytes = live(tq, tk)
    return pl.pallas_call(
        kernel,
        grid=(B, n_groups, S // tq, S // tk),
        in_specs=[
            pl.BlockSpec((1, tq, gw), lambda b, g, qi, ki: (b, qi, g)),
            pl.BlockSpec((1, tk, gw), lambda b, g, qi, ki: (b, ki, H // gw + g)),
            pl.BlockSpec((1, tk, gw), lambda b, g, qi, ki: (b, ki, 2 * (H // gw) + g)),
        ],
        out_specs=pl.BlockSpec((1, tq, gw), lambda b, g, qi, ki: (b, qi, g)),
        out_shape=jax.ShapeDtypeStruct((B, S, H), jnp.bfloat16),
        scratch_shapes=[pltpu.VMEM((hpg, tq, 1), jnp.float32),
                        pltpu.VMEM((hpg, tq, 1), jnp.float32),
                        pltpu.VMEM((tq, gw), jnp.float32)],
        compiler_params=_compiler_params(
            ("parallel", "parallel", "parallel", "arbitrary"), blk_bytes),
        cost_estimate=pl.CostEstimate(
            flops=4 * B * n_heads * S * S * hd,
            transcendentals=B * n_heads * S * S,
            bytes_accessed=2 * B * S * (3 * H + H)),
    )(qkv, qkv, qkv)


def pallas_cls_head(cls_tok, w, b, n_rel):
    """sigmoid(cls @ w + b); cls:[B,H] bf16, w:[H,Rp] with Rp lane-padded."""
    B, H = cls_tok.shape
    Rp = w.shape[1]

    def kernel(c_ref, w_ref, b_ref, o_ref):
        logits = jnp.dot(c_ref[...], w_ref[...],
                         preferred_element_type=jnp.float32) + b_ref[...]
        o_ref[...] = 1.0 / (1.0 + jnp.exp(-logits))

    out = pl.pallas_call(
        kernel,
        grid=(1,),
        in_specs=[pl.BlockSpec((B, H), lambda i: (0, 0)),
                  pl.BlockSpec((H, Rp), lambda i: (0, 0)),
                  pl.BlockSpec((1, Rp), lambda i: (0, 0))],
        out_specs=pl.BlockSpec((B, Rp), lambda i: (0, 0)),
        out_shape=jax.ShapeDtypeStruct((B, Rp), jnp.float32),
        compiler_params=_compiler_params(
            ("arbitrary",), 2 * (B * H + H * Rp) + 4 * (Rp + B * Rp)),
    )(cls_tok, w, b.reshape(1, Rp))
    return out[:, :n_rel]


# --------------------------------------------------------------- mini BERT ---
def init_params(key, vocab, max_seq, hidden, ffn, n_layers, n_rel):
    std = 0.02
    n_rel_pad = ((n_rel + 127) // 128) * 128          # lane-dense fc output
    keys = iter(jax.random.split(key, 4 + 4 * n_layers))

    def nrm(shape, dtype=jnp.bfloat16):
        return (std * jax.random.normal(next(keys), shape, jnp.float32)).astype(dtype)

    fc_w = jnp.zeros((hidden, n_rel_pad), jnp.float32)
    fc_w = fc_w.at[:, :n_rel].set(
        std * jax.random.normal(next(keys), (hidden, n_rel), jnp.float32))

    params = {
        "tok_emb": nrm((vocab, hidden), jnp.float32),
        "pos_emb": nrm((max_seq, hidden), jnp.float32),
        "emb_ln_g": jnp.ones((hidden,), jnp.float32),
        "emb_ln_b": jnp.zeros((hidden,), jnp.float32),
        "fc_w": fc_w.astype(jnp.bfloat16),
        "fc_b": jnp.zeros((n_rel_pad,), jnp.float32),
        "layers": [],
    }
    for _ in range(n_layers):
        params["layers"].append({
            # Q, K, V projections fused into one [H, 3H] weight.
            "w_qkv": nrm((hidden, 3 * hidden)),
            "b_qkv": jnp.zeros((3 * hidden,), jnp.float32),
            "wo": nrm((hidden, hidden)),
            "bo": jnp.zeros((hidden,), jnp.float32),
            "ln1_g": jnp.ones((hidden,), jnp.float32),
            "ln1_b": jnp.zeros((hidden,), jnp.float32),
            "w1": nrm((hidden, ffn)),
            "b1": jnp.zeros((ffn,), jnp.float32),
            "w2": nrm((ffn, hidden)),
            "b2": jnp.zeros((hidden,), jnp.float32),
            "ln2_g": jnp.ones((hidden,), jnp.float32),
            "ln2_b": jnp.zeros((hidden,), jnp.float32),
        })
    return params


def rc_model_forward(token_ids, params, n_heads, n_rel):
    """RCModel.forward: sigmoid(fc(bert(x).last_hidden_state[:, 0, :]))"""
    B, S = token_ids.shape
    H = params["tok_emb"].shape[1]

    # embeddings (gather stays in JAX glue) + embedding LayerNorm (Pallas).
    # TODO(synk): real RCModel loads pretrained BERT weights + tokenizer and adds
    # token-type embeddings / attention mask; here the encoder is randomly
    # initialized and all tokens are treated as valid.
    emb = params["tok_emb"][token_ids] + params["pos_emb"][:S][None, :, :]
    h = pallas_layernorm(emb.reshape(B * S, H),
                         params["emb_ln_g"], params["emb_ln_b"])       # [M,H] bf16

    n_layers = len(params["layers"])
    for li, p in enumerate(params["layers"]):
        last = li == n_layers - 1
        qkv = pallas_dense(h, p["w_qkv"], p["b_qkv"])                   # [M,3H]
        attn = pallas_flash_attention(qkv.reshape(B, S, 3 * H), n_heads)
        if last:
            # Only the CLS rows feed the classifier head; LayerNorm/FFN are
            # per-row, so restricting the post-attention work to B rows is exact.
            attn_rows = attn[:, 0, :]                                   # [B, H]
            res_rows = h.reshape(B, S, H)[:, 0, :]                      # [B, H]
        else:
            attn_rows = attn.reshape(B * S, H)
            res_rows = h
        h = pallas_dense_res_ln(attn_rows, p["wo"], p["bo"],
                                res_rows, p["ln1_g"], p["ln1_b"])       # proj+res+LN
        ff = pallas_dense(h, p["w1"], p["b1"], activation="gelu")       # [rows,FFN]
        h = pallas_dense_res_ln(ff, p["w2"], p["b2"],
                                h, p["ln2_g"], p["ln2_b"])              # ffn+res+LN

    if n_layers == 0:
        h = h.reshape(B, S, H)[:, 0, :]
    cls = h                                   # [B, H]: only the CLS rows remain
    return pallas_cls_head(cls, params["fc_w"], params["fc_b"], n_rel)


# --------------------------------------------------------------------- main --
if __name__ == "__main__":
    # small shapes consistent with the module (BERT hidden=768 scaled down)
    B, S = 2, 8
    HIDDEN, N_HEADS, FFN, N_LAYERS = 128, 2, 256, 2
    VOCAB, MAX_SEQ = 50, 16
    N_REL = 8  # stand-in for len(rel_map)

    root = jax.random.PRNGKey(0)
    k_param, k_data = jax.random.split(root)
    params = init_params(k_param, VOCAB, MAX_SEQ, HIDDEN, FFN, N_LAYERS, N_REL)
    x = jax.random.randint(k_data, (B, S), 0, VOCAB, dtype=jnp.int32)

    fwd = jax.jit(partial(rc_model_forward, n_heads=N_HEADS, n_rel=N_REL))
    out = jax.block_until_ready(fwd(x, params))

    assert out.shape == (B, N_REL)
    assert bool(jnp.all((out >= 0.0) & (out <= 1.0)))
    print("KERNEL_OK")
</pallas_src>

<mosaic_0001>
module attributes {stable_mosaic.version = 11 : i64} {
  func.func @kernel(%arg0: i32, %arg1: memref<16x128xf32, #tpu.memory_space<vmem>>, %arg2: memref<1x128xf32, #tpu.memory_space<vmem>>, %arg3: memref<1x128xf32, #tpu.memory_space<vmem>>, %arg4: memref<16x128xbf16, #tpu.memory_space<vmem>>) attributes {dimension_semantics = [#tpu.dimension_semantics<parallel>], iteration_bounds = array<i64: 1>, scalar_prefetch = 0 : i64, scratch_operands = 0 : i64, tpu.core_type = #tpu.core_type<tc>, window_params = [{transform_indices = @transform_0, window_bounds = array<i64: 16, 128>}, {pipeline_mode = #tpu.pipeline_mode<synchronous>, transform_indices = @transform_1, window_bounds = array<i64: 1, 128>}, {pipeline_mode = #tpu.pipeline_mode<synchronous>, transform_indices = @transform_2, window_bounds = array<i64: 1, 128>}, {transform_indices = @transform_3, window_bounds = array<i64: 16, 128>}]} {
    %c0 = arith.constant 0 : index
    %c0_0 = arith.constant 0 : index
    %0 = vector.load %arg1[%c0, %c0_0] : memref<16x128xf32, #tpu.memory_space<vmem>>, vector<16x128xf32>
    %cst = arith.constant dense<0.000000e+00> : vector<16xf32>
    %1 = vector.multi_reduction <add>, %0, %cst [1] : vector<16x128xf32> to vector<16xf32>
    %2 = vector.shape_cast %1 : vector<16xf32> to vector<16x1xf32>
    %cst_1 = arith.constant 1.280000e+02 : f32
    %3 = vector.broadcast %cst_1 : f32 to vector<16x1xf32>
    %4 = arith.divf %2, %3 : vector<16x1xf32>
    %5 = vector.broadcast %4 : vector<16x1xf32> to vector<16x128xf32>
    %6 = arith.subf %0, %5 : vector<16x128xf32>
    %7 = arith.mulf %6, %6 : vector<16x128xf32>
    %cst_2 = arith.constant dense<0.000000e+00> : vector<16xf32>
    %8 = vector.multi_reduction <add>, %7, %cst_2 [1] : vector<16x128xf32> to vector<16xf32>
    %9 = vector.shape_cast %8 : vector<16xf32> to vector<16x1xf32>
    %cst_3 = arith.constant 1.280000e+02 : f32
    %10 = vector.broadcast %cst_3 : f32 to vector<16x1xf32>
    %11 = arith.divf %9, %10 : vector<16x1xf32>
    %12 = vector.broadcast %4 : vector<16x1xf32> to vector<16x128xf32>
    %13 = arith.subf %0, %12 : vector<16x128xf32>
    %cst_4 = arith.constant 9.99999996E-13 : f32
    %14 = vector.broadcast %cst_4 : f32 to vector<16x1xf32>
    %15 = arith.addf %11, %14 : vector<16x1xf32>
    %16 = math.rsqrt %15 : vector<16x1xf32>
    %17 = vector.broadcast %16 : vector<16x1xf32> to vector<16x128xf32>
    %18 = arith.mulf %13, %17 : vector<16x128xf32>
    %c0_5 = arith.constant 0 : index
    %c0_6 = arith.constant 0 : index
    %19 = vector.load %arg2[%c0_5, %c0_6] : memref<1x128xf32, #tpu.memory_space<vmem>>, vector<1x128xf32>
    %20 = vector.broadcast %19 : vector<1x128xf32> to vector<16x128xf32>
    %21 = arith.mulf %18, %20 : vector<16x128xf32>
    %c0_7 = arith.constant 0 : index
    %c0_8 = arith.constant 0 : index
    %22 = vector.load %arg3[%c0_7, %c0_8] : memref<1x128xf32, #tpu.memory_space<vmem>>, vector<1x128xf32>
    %23 = vector.broadcast %22 : vector<1x128xf32> to vector<16x128xf32>
    %24 = arith.addf %21, %23 : vector<16x128xf32>
    %25 = arith.truncf %24 : vector<16x128xf32> to vector<16x128xbf16>
    %c0_9 = arith.constant 0 : index
    %c0_10 = arith.constant 0 : index
    %26 = vector.load %arg4[%c0_9, %c0_10] : memref<16x128xbf16, #tpu.memory_space<vmem>>, vector<16x128xbf16>
    tpu.vector_store %arg4[%c0_9, %c0_10], %25 {strides = array<i32>} : memref<16x128xbf16, #tpu.memory_space<vmem>>, vector<16x128xbf16>,
    return
  }
  func.func @transform_0(%arg0: i32) -> (i32, i32) {
    %c0_i32 = arith.constant 0 : i32
    %c0_i32_0 = arith.constant 0 : i32
    return %arg0, %c0_i32 : i32, i32
  }
  func.func @transform_1(%arg0: i32) -> (i32, i32) {
    %c0_i32 = arith.constant 0 : i32
    %c0_i32_0 = arith.constant 0 : i32
    %c0_i32_1 = arith.constant 0 : i32
    return %c0_i32, %c0_i32_0 : i32, i32
  }
  func.func @transform_2(%arg0: i32) -> (i32, i32) {
    %c0_i32 = arith.constant 0 : i32
    %c0_i32_0 = arith.constant 0 : i32
    %c0_i32_1 = arith.constant 0 : i32
    return %c0_i32, %c0_i32_0 : i32, i32
  }
  func.func @transform_3(%arg0: i32) -> (i32, i32) {
    %c0_i32 = arith.constant 0 : i32
    %c0_i32_0 = arith.constant 0 : i32
    return %arg0, %c0_i32 : i32, i32
  }
}

module attributes {stable_mosaic.version = 11 : i64} {
  func.func @kernel(%arg0: i32, %arg1: i32, %arg2: memref<16x128xbf16, #tpu.memory_space<vmem>>, %arg3: memref<128x384xbf16, #tpu.memory_space<vmem>>, %arg4: memref<1x384xf32, #tpu.memory_space<vmem>>, %arg5: memref<16x384xbf16, #tpu.memory_space<vmem>>) attributes {dimension_semantics = [#tpu.dimension_semantics<parallel>, #tpu.dimension_semantics<parallel>], iteration_bounds = array<i64: 1, 1>, scalar_prefetch = 0 : i64, scratch_operands = 0 : i64, tpu.core_type = #tpu.core_type<tc>, window_params = [{transform_indices = @transform_0, window_bounds = array<i64: 16, 128>}, {transform_indices = @transform_1, window_bounds = array<i64: 128, 384>}, {transform_indices = @transform_2, window_bounds = array<i64: 1, 384>}, {transform_indices = @transform_3, window_bounds = array<i64: 16, 384>}]} {
    %c0 = arith.constant 0 : index
    %c0_0 = arith.constant 0 : index
    %0 = vector.load %arg2[%c0, %c0_0] : memref<16x128xbf16, #tpu.memory_space<vmem>>, vector<16x128xbf16>
    %c0_1 = arith.constant 0 : index
    %c0_2 = arith.constant 0 : index
    %1 = vector.load %arg3[%c0_1, %c0_2] : memref<128x384xbf16, #tpu.memory_space<vmem>>, vector<128x384xbf16>
    %cst = arith.constant dense<0.000000e+00> : vector<16x384xf32>
    %2 = tpu.matmul %0, %1, %cst {dimension_numbers = #tpu.dot_dimension_numbers<[1], [0], [0], [1], [0, 0, 1, 1], [], []>} : vector<16x128xbf16>, vector<128x384xbf16>, vector<16x384xf32> -> vector<16x384xf32>
    %c0_3 = arith.constant 0 : index
    %c0_4 = arith.constant 0 : index
    %3 = vector.load %arg4[%c0_3, %c0_4] : memref<1x384xf32, #tpu.memory_space<vmem>>, vector<1x384xf32>
    %4 = vector.broadcast %3 : vector<1x384xf32> to vector<16x384xf32>
    %5 = arith.addf %2, %4 : vector<16x384xf32>
    %6 = arith.truncf %5 : vector<16x384xf32> to vector<16x384xbf16>
    %c0_5 = arith.constant 0 : index
    %c0_6 = arith.constant 0 : index
    %7 = vector.load %arg5[%c0_5, %c0_6] : memref<16x384xbf16, #tpu.memory_space<vmem>>, vector<16x384xbf16>
    tpu.vector_store %arg5[%c0_5, %c0_6], %6 {strides = array<i32>} : memref<16x384xbf16, #tpu.memory_space<vmem>>, vector<16x384xbf16>,
    return
  }
  func.func @transform_0(%arg0: i32, %arg1: i32) -> (i32, i32) {
    %c0_i32 = arith.constant 0 : i32
    %c0_i32_0 = arith.constant 0 : i32
    return %arg0, %c0_i32 : i32, i32
  }
  func.func @transform_1(%arg0: i32, %arg1: i32) -> (i32, i32) {
    %c0_i32 = arith.constant 0 : i32
    %c0_i32_0 = arith.constant 0 : i32
    return %c0_i32, %arg1 : i32, i32
  }
  func.func @transform_2(%arg0: i32, %arg1: i32) -> (i32, i32) {
    %c0_i32 = arith.constant 0 : i32
    %c0_i32_0 = arith.constant 0 : i32
    return %c0_i32, %arg1 : i32, i32
  }
  func.func @transform_3(%arg0: i32, %arg1: i32) -> (i32, i32) {
    %c0_i32 = arith.constant 0 : i32
    return %arg0, %arg1 : i32, i32
  }
}

module attributes {stable_mosaic.version = 11 : i64} {
  func.func @kernel(%arg0: i32, %arg1: memref<16x128xbf16, #tpu.memory_space<vmem>>, %arg2: memref<128x128xbf16, #tpu.memory_space<vmem>>, %arg3: memref<1x128xf32, #tpu.memory_space<vmem>>, %arg4: memref<16x128xbf16, #tpu.memory_space<vmem>>, %arg5: memref<1x128xf32, #tpu.memory_space<vmem>>, %arg6: memref<1x128xf32, #tpu.memory_space<vmem>>, %arg7: memref<16x128xbf16, #tpu.memory_space<vmem>>) attributes {dimension_semantics = [#tpu.dimension_semantics<parallel>], iteration_bounds = array<i64: 1>, scalar_prefetch = 0 : i64, scratch_operands = 0 : i64, tpu.core_type = #tpu.core_type<tc>, window_params = [{transform_indices = @transform_0, window_bounds = array<i64: 16, 128>}, {pipeline_mode = #tpu.pipeline_mode<synchronous>, transform_indices = @transform_1, window_bounds = array<i64: 128, 128>}, {pipeline_mode = #tpu.pipeline_mode<synchronous>, transform_indices = @transform_2, window_bounds = array<i64: 1, 128>}, {transform_indices = @transform_3, window_bounds = array<i64: 16, 128>}, {pipeline_mode = #tpu.pipeline_mode<synchronous>, transform_indices = @transform_4, window_bounds = array<i64: 1, 128>}, {pipeline_mode = #tpu.pipeline_mode<synchronous>, transform_indices = @transform_5, window_bounds = array<i64: 1, 128>}, {transform_indices = @transform_6, window_bounds = array<i64: 16, 128>}]} {
    %c0 = arith.constant 0 : index
    %c0_0 = arith.constant 0 : index
    %0 = vector.load %arg1[%c0, %c0_0] : memref<16x128xbf16, #tpu.memory_space<vmem>>, vector<16x128xbf16>
    %c0_1 = arith.constant 0 : index
    %c0_2 = arith.constant 0 : index
    %1 = vector.load %arg2[%c0_1, %c0_2] : memref<128x128xbf16, #tpu.memory_space<vmem>>, vector<128x128xbf16>
    %cst = arith.constant dense<0.000000e+00> : vector<16x128xf32>
    %2 = tpu.matmul %0, %1, %cst {dimension_numbers = #tpu.dot_dimension_numbers<[1], [0], [0], [1], [0, 0, 1, 1], [], []>} : vector<16x128xbf16>, vector<128x128xbf16>, vector<16x128xf32> -> vector<16x128xf32>
    %c0_3 = arith.constant 0 : index
    %c0_4 = arith.constant 0 : index
    %3 = vector.load %arg3[%c0_3, %c0_4] : memref<1x128xf32, #tpu.memory_space<vmem>>, vector<1x128xf32>
    %4 = vector.broadcast %3 : vector<1x128xf32> to vector<16x128xf32>
    %5 = arith.addf %2, %4 : vector<16x128xf32>
    %c0_5 = arith.constant 0 : index
    %c0_6 = arith.constant 0 : index
    %6 = vector.load %arg4[%c0_5, %c0_6] : memref<16x128xbf16, #tpu.memory_space<vmem>>, vector<16x128xbf16>
    %7 = arith.extf %6 : vector<16x128xbf16> to vector<16x128xf32>
    %8 = arith.addf %5, %7 : vector<16x128xf32>
    %cst_7 = arith.constant dense<0.000000e+00> : vector<16xf32>
    %9 = vector.multi_reduction <add>, %8, %cst_7 [1] : vector<16x128xf32> to vector<16xf32>
    %10 = vector.shape_cast %9 : vector<16xf32> to vector<16x1xf32>
    %cst_8 = arith.constant 1.280000e+02 : f32
    %11 = vector.broadcast %cst_8 : f32 to vector<16x1xf32>
    %12 = arith.divf %10, %11 : vector<16x1xf32>
    %13 = vector.broadcast %12 : vector<16x1xf32> to vector<16x128xf32>
    %14 = arith.subf %8, %13 : vector<16x128xf32>
    %15 = arith.mulf %14, %14 : vector<16x128xf32>
    %cst_9 = arith.constant dense<0.000000e+00> : vector<16xf32>
    %16 = vector.multi_reduction <add>, %15, %cst_9 [1] : vector<16x128xf32> to vector<16xf32>
    %17 = vector.shape_cast %16 : vector<16xf32> to vector<16x1xf32>
    %cst_10 = arith.constant 1.280000e+02 : f32
    %18 = vector.broadcast %cst_10 : f32 to vector<16x1xf32>
    %19 = arith.divf %17, %18 : vector<16x1xf32>
    %20 = vector.broadcast %12 : vector<16x1xf32> to vector<16x128xf32>
    %21 = arith.subf %8, %20 : vector<16x128xf32>
    %cst_11 = arith.constant 9.99999996E-13 : f32
    %22 = vector.broadcast %cst_11 : f32 to vector<16x1xf32>
    %23 = arith.addf %19, %22 : vector<16x1xf32>
    %24 = math.rsqrt %23 : vector<16x1xf32>
    %25 = vector.broadcast %24 : vector<16x1xf32> to vector<16x128xf32>
    %26 = arith.mulf %21, %25 : vector<16x128xf32>
    %c0_12 = arith.constant 0 : index
    %c0_13 = arith.constant 0 : index
    %27 = vector.load %arg5[%c0_12, %c0_13] : memref<1x128xf32, #tpu.memory_space<vmem>>, vector<1x128xf32>
    %28 = vector.broadcast %27 : vector<1x128xf32> to vector<16x128xf32>
    %29 = arith.mulf %26, %28 : vector<16x128xf32>
    %c0_14 = arith.constant 0 : index
    %c0_15 = arith.constant 0 : index
    %30 = vector.load %arg6[%c0_14, %c0_15] : memref<1x128xf32, #tpu.memory_space<vmem>>, vector<1x128xf32>
    %31 = vector.broadcast %30 : vector<1x128xf32> to vector<16x128xf32>
    %32 = arith.addf %29, %31 : vector<16x128xf32>
    %33 = arith.truncf %32 : vector<16x128xf32> to vector<16x128xbf16>
    %c0_16 = arith.constant 0 : index
    %c0_17 = arith.constant 0 : index
    %34 = vector.load %arg7[%c0_16, %c0_17] : memref<16x128xbf16, #tpu.memory_space<vmem>>, vector<16x128xbf16>
    tpu.vector_store %arg7[%c0_16, %c0_17], %33 {strides = array<i32>} : memref<16x128xbf16, #tpu.memory_space<vmem>>, vector<16x128xbf16>,
    return
  }
  func.func @transform_0(%arg0: i32) -> (i32, i32) {
    %c0_i32 = arith.constant 0 : i32
    %c0_i32_0 = arith.constant 0 : i32
    return %arg0, %c0_i32 : i32, i32
  }
  func.func @transform_1(%arg0: i32) -> (i32, i32) {
    %c0_i32 = arith.constant 0 : i32
    %c0_i32_0 = arith.constant 0 : i32
    %c0_i32_1 = arith.constant 0 : i32
    return %c0_i32, %c0_i32_0 : i32, i32
  }
  func.func @transform_2(%arg0: i32) -> (i32, i32) {
    %c0_i32 = arith.constant 0 : i32
    %c0_i32_0 = arith.constant 0 : i32
    %c0_i32_1 = arith.constant 0 : i32
    return %c0_i32, %c0_i32_0 : i32, i32
  }
  func.func @transform_3(%arg0: i32) -> (i32, i32) {
    %c0_i32 = arith.constant 0 : i32
    %c0_i32_0 = arith.constant 0 : i32
    return %arg0, %c0_i32 : i32, i32
  }
  func.func @transform_4(%arg0: i32) -> (i32, i32) {
    %c0_i32 = arith.constant 0 : i32
    %c0_i32_0 = arith.constant 0 : i32
    %c0_i32_1 = arith.constant 0 : i32
    return %c0_i32, %c0_i32_0 : i32, i32
  }
  func.func @transform_5(%arg0: i32) -> (i32, i32) {
    %c0_i32 = arith.constant 0 : i32
    %c0_i32_0 = arith.constant 0 : i32
    %c0_i32_1 = arith.constant 0 : i32
    return %c0_i32, %c0_i32_0 : i32, i32
  }
  func.func @transform_6(%arg0: i32) -> (i32, i32) {
    %c0_i32 = arith.constant 0 : i32
    %c0_i32_0 = arith.constant 0 : i32
    return %arg0, %c0_i32 : i32, i32
  }
}

module attributes {stable_mosaic.version = 11 : i64} {
  func.func @kernel(%arg0: i32, %arg1: i32, %arg2: i32, %arg3: i32, %arg4: memref<1x8x128xbf16, #tpu.memory_space<vmem>>, %arg5: memref<1x8x128xbf16, #tpu.memory_space<vmem>>, %arg6: memref<1x8x128xbf16, #tpu.memory_space<vmem>>, %arg7: memref<1x8x128xbf16, #tpu.memory_space<vmem>>, %arg8: memref<2x8x1xf32, #tpu.memory_space<vmem>>, %arg9: memref<2x8x1xf32, #tpu.memory_space<vmem>>, %arg10: memref<8x128xf32, #tpu.memory_space<vmem>>) attributes {dimension_semantics = [#tpu.dimension_semantics<parallel>, #tpu.dimension_semantics<parallel>, #tpu.dimension_semantics<parallel>, #tpu.dimension_semantics<arbitrary>], iteration_bounds = array<i64: 2, 1, 1, 1>, scalar_prefetch = 0 : i64, scratch_operands = 3 : i64, tpu.core_type = #tpu.core_type<tc>, window_params = [{transform_indices = @transform_0, window_bounds = array<i64: 1, 8, 128>}, {transform_indices = @transform_1, window_bounds = array<i64: 1, 8, 128>}, {transform_indices = @transform_2, window_bounds = array<i64: 1, 8, 128>}, {transform_indices = @transform_3, window_bounds = array<i64: 1, 8, 128>}]} {
    %c0_i32 = arith.constant 0 : i32
    %0 = arith.cmpi eq, %arg3, %c0_i32 : i32
    %1 = arith.extui %0 : i1 to i32
    %c0_i32_0 = arith.constant 0 : i32
    %2 = arith.cmpi ne, %1, %c0_i32_0 : i32
    scf.if %2 {
      %cst_59 = arith.constant -1.000000e+30 : f32
      %82 = vector.broadcast %cst_59 : f32 to vector<2x8x1xf32>
      %c0_60 = arith.constant 0 : index
      %c0_61 = arith.constant 0 : index
      %c0_62 = arith.constant 0 : index
      %83 = vector.load %arg8[%c0_60, %c0_61, %c0_62] : memref<2x8x1xf32, #tpu.memory_space<vmem>>, vector<2x8x1xf32>
      tpu.vector_store %arg8[%c0_60, %c0_61, %c0_62], %82 {strides = array<i32>} : memref<2x8x1xf32, #tpu.memory_space<vmem>>, vector<2x8x1xf32>,
      %cst_63 = arith.constant 0.000000e+00 : f32
      %84 = vector.broadcast %cst_63 : f32 to vector<2x8x1xf32>
      %c0_64 = arith.constant 0 : index
      %c0_65 = arith.constant 0 : index
      %c0_66 = arith.constant 0 : index
      %85 = vector.load %arg9[%c0_64, %c0_65, %c0_66] : memref<2x8x1xf32, #tpu.memory_space<vmem>>, vector<2x8x1xf32>
      tpu.vector_store %arg9[%c0_64, %c0_65, %c0_66], %84 {strides = array<i32>} : memref<2x8x1xf32, #tpu.memory_space<vmem>>, vector<2x8x1xf32>,
      %cst_67 = arith.constant 0.000000e+00 : f32
      %86 = vector.broadcast %cst_67 : f32 to vector<8x128xf32>
      %c0_68 = arith.constant 0 : index
      %c0_69 = arith.constant 0 : index
      %87 = vector.load %arg10[%c0_68, %c0_69] : memref<8x128xf32, #tpu.memory_space<vmem>>, vector<8x128xf32>
      tpu.vector_store %arg10[%c0_68, %c0_69], %86 {strides = array<i32>} : memref<8x128xf32, #tpu.memory_space<vmem>>, vector<8x128xf32>,
    } else {
    }
    %c0 = arith.constant 0 : index
    %c0_1 = arith.constant 0 : index
    %c0_2 = arith.constant 0 : index
    %3 = vector.load %arg4[%c0, %c0_1, %c0_2] : memref<1x8x128xbf16, #tpu.memory_space<vmem>>, vector<1x8x64xbf16>
    %4 = vector.shape_cast %3 : vector<1x8x64xbf16> to vector<8x64xbf16>
    %cst = arith.constant 1.250000e-01 : bf16
    %5 = vector.broadcast %cst : bf16 to vector<8x64xbf16>
    %6 = arith.mulf %4, %5 : vector<8x64xbf16>
    %c0_3 = arith.constant 0 : index
    %c0_4 = arith.constant 0 : index
    %c0_5 = arith.constant 0 : index
    %7 = vector.load %arg5[%c0_3, %c0_4, %c0_5] : memref<1x8x128xbf16, #tpu.memory_space<vmem>>, vector<1x8x64xbf16>
    %8 = vector.shape_cast %7 : vector<1x8x64xbf16> to vector<8x64xbf16>
    %c0_6 = arith.constant 0 : index
    %c0_7 = arith.constant 0 : index
    %c0_8 = arith.constant 0 : index
    %9 = vector.load %arg6[%c0_6, %c0_7, %c0_8] : memref<1x8x128xbf16, #tpu.memory_space<vmem>>, vector<1x8x64xbf16>
    %10 = vector.shape_cast %9 : vector<1x8x64xbf16> to vector<8x64xbf16>
    %cst_9 = arith.constant dense<0.000000e+00> : vector<8x8xf32>
    %11 = tpu.matmul %6, %8, %cst_9 {dimension_numbers = #tpu.dot_dimension_numbers<[1], [1], [0], [0], [0, 0, 1, 0], [], []>} : vector<8x64xbf16>, vector<8x64xbf16>, vector<8x8xf32> -> vector<8x8xf32>
    %c0_10 = arith.constant 0 : index
    %c0_11 = arith.constant 0 : index
    %c0_12 = arith.constant 0 : index
    %12 = vector.load %arg8[%c0_10, %c0_11, %c0_12] : memref<2x8x1xf32, #tpu.memory_space<vmem>>, vector<1x8x1xf32>
    %13 = vector.shape_cast %12 : vector<1x8x1xf32> to vector<8x1xf32>
    %cst_13 = arith.constant dense<0xFF800000> : vector<8xf32>
    %14 = vector.multi_reduction <maximumf>, %11, %cst_13 [1] : vector<8x8xf32> to vector<8xf32>
    %15 = vector.shape_cast %14 : vector<8xf32> to vector<8x1xf32>
    %16 = arith.maximumf %13, %15 : vector<8x1xf32>
    %17 = arith.subf %13, %16 : vector<8x1xf32>
    %18 = math.exp %17 : vector<8x1xf32>
    %19 = vector.broadcast %16 : vector<8x1xf32> to vector<8x8xf32>
    %20 = arith.subf %11, %19 : vector<8x8xf32>
    %21 = math.exp %20 : vector<8x8xf32>
    %c0_14 = arith.constant 0 : index
    %c0_15 = arith.constant 0 : index
    %c0_16 = arith.constant 0 : index
    %22 = vector.load %arg9[%c0_14, %c0_15, %c0_16] : memref<2x8x1xf32, #tpu.memory_space<vmem>>, vector<1x8x1xf32>
    %23 = vector.shape_cast %22 : vector<1x8x1xf32> to vector<8x1xf32>
    %24 = arith.mulf %18, %23 : vector<8x1xf32>
    %cst_17 = arith.constant dense<0.000000e+00> : vector<8xf32>
    %25 = vector.multi_reduction <add>, %21, %cst_17 [1] : vector<8x8xf32> to vector<8xf32>
    %26 = vector.shape_cast %25 : vector<8xf32> to vector<8x1xf32>
    %27 = arith.addf %24, %26 : vector<8x1xf32>
    %c0_18 = arith.constant 0 : index
    %c0_19 = arith.constant 0 : index
    %c0_20 = arith.constant 0 : index
    %28 = vector.load %arg9[%c0_18, %c0_19, %c0_20] : memref<2x8x1xf32, #tpu.memory_space<vmem>>, vector<1x8x1xf32>
    %29 = vector.shape_cast %28 : vector<1x8x1xf32> to vector<8x1xf32>
    %30 = vector.shape_cast %27 : vector<8x1xf32> to vector<1x8x1xf32>
    tpu.vector_store %arg9[%c0_18, %c0_19, %c0_20], %30 {strides = array<i32>} : memref<2x8x1xf32, #tpu.memory_space<vmem>>, vector<1x8x1xf32>,
    %c0_21 = arith.constant 0 : index
    %c0_22 = arith.constant 0 : index
    %31 = vector.load %arg10[%c0_21, %c0_22] : memref<8x128xf32, #tpu.memory_space<vmem>>, vector<8x64xf32>
    %32 = vector.broadcast %18 : vector<8x1xf32> to vector<8x64xf32>
    %33 = arith.mulf %32, %31 : vector<8x64xf32>
    %34 = arith.truncf %21 : vector<8x8xf32> to vector<8x8xbf16>
    %cst_23 = arith.constant dense<0.000000e+00> : vector<8x64xf32>
    %35 = tpu.matmul %34, %10, %cst_23 {dimension_numbers = #tpu.dot_dimension_numbers<[1], [0], [0], [1], [0, 0, 1, 1], [], []>} : vector<8x8xbf16>, vector<8x64xbf16>, vector<8x64xf32> -> vector<8x64xf32>
    %36 = arith.addf %33, %35 : vector<8x64xf32>
    %c0_24 = arith.constant 0 : index
    %c0_25 = arith.constant 0 : index
    %37 = vector.load %arg10[%c0_24, %c0_25] : memref<8x128xf32, #tpu.memory_space<vmem>>, vector<8x64xf32>
    tpu.vector_store %arg10[%c0_24, %c0_25], %36 {strides = array<i32>} : memref<8x128xf32, #tpu.memory_space<vmem>>, vector<8x64xf32>,
    %c0_26 = arith.constant 0 : index
    %c0_27 = arith.constant 0 : index
    %c0_28 = arith.constant 0 : index
    %38 = vector.load %arg8[%c0_26, %c0_27, %c0_28] : memref<2x8x1xf32, #tpu.memory_space<vmem>>, vector<1x8x1xf32>
    %39 = vector.shape_cast %38 : vector<1x8x1xf32> to vector<8x1xf32>
    %40 = vector.shape_cast %16 : vector<8x1xf32> to vector<1x8x1xf32>
    tpu.vector_store %arg8[%c0_26, %c0_27, %c0_28], %40 {strides = array<i32>} : memref<2x8x1xf32, #tpu.memory_space<vmem>>, vector<1x8x1xf32>,
    %c0_29 = arith.constant 0 : index
    %c0_30 = arith.constant 0 : index
    %c64 = arith.constant 64 : index
    %41 = vector.load %arg4[%c0_29, %c0_30, %c64] : memref<1x8x128xbf16, #tpu.memory_space<vmem>>, vector<1x8x64xbf16>
    %42 = vector.shape_cast %41 : vector<1x8x64xbf16> to vector<8x64xbf16>
    %cst_31 = arith.constant 1.250000e-01 : bf16
    %43 = vector.broadcast %cst_31 : bf16 to vector<8x64xbf16>
    %44 = arith.mulf %42, %43 : vector<8x64xbf16>
    %c0_32 = arith.constant 0 : index
    %c0_33 = arith.constant 0 : index
    %c64_34 = arith.constant 64 : index
    %45 = vector.load %arg5[%c0_32, %c0_33, %c64_34] : memref<1x8x128xbf16, #tpu.memory_space<vmem>>, vector<1x8x64xbf16>
    %46 = vector.shape_cast %45 : vector<1x8x64xbf16> to vector<8x64xbf16>
    %c0_35 = arith.constant 0 : index
    %c0_36 = arith.constant 0 : index
    %c64_37 = arith.constant 64 : index
    %47 = vector.load %arg6[%c0_35, %c0_36, %c64_37] : memref<1x8x128xbf16, #tpu.memory_space<vmem>>, vector<1x8x64xbf16>
    %48 = vector.shape_cast %47 : vector<1x8x64xbf16> to vector<8x64xbf16>
    %cst_38 = arith.constant dense<0.000000e+00> : vector<8x8xf32>
    %49 = tpu.matmul %44, %46, %cst_38 {dimension_numbers = #tpu.dot_dimension_numbers<[1], [1], [0], [0], [0, 0, 1, 0], [], []>} : vector<8x64xbf16>, vector<8x64xbf16>, vector<8x8xf32> -> vector<8x8xf32>
    %c1 = arith.constant 1 : index
    %c0_39 = arith.constant 0 : index
    %c0_40 = arith.constant 0 : index
    %50 = vector.load %arg8[%c1, %c0_39, %c0_40] : memref<2x8x1xf32, #tpu.memory_space<vmem>>, vector<1x8x1xf32>
    %51 = vector.shape_cast %50 : vector<1x8x1xf32> to vector<8x1xf32>
    %cst_41 = arith.constant dense<0xFF800000> : vector<8xf32>
    %52 = vector.multi_reduction <maximumf>, %49, %cst_41 [1] : vector<8x8xf32> to vector<8xf32>
    %53 = vector.shape_cast %52 : vector<8xf32> to vector<8x1xf32>
    %54 = arith.maximumf %51, %53 : vector<8x1xf32>
    %55 = arith.subf %51, %54 : vector<8x1xf32>
    %56 = math.exp %55 : vector<8x1xf32>
    %57 = vector.broadcast %54 : vector<8x1xf32> to vector<8x8xf32>
    %58 = arith.subf %49, %57 : vector<8x8xf32>
    %59 = math.exp %58 : vector<8x8xf32>
    %c1_42 = arith.constant 1 : index
    %c0_43 = arith.constant 0 : index
    %c0_44 = arith.constant 0 : index
    %60 = vector.load %arg9[%c1_42, %c0_43, %c0_44] : memref<2x8x1xf32, #tpu.memory_space<vmem>>, vector<1x8x1xf32>
    %61 = vector.shape_cast %60 : vector<1x8x1xf32> to vector<8x1xf32>
    %62 = arith.mulf %56, %61 : vector<8x1xf32>
    %cst_45 = arith.constant dense<0.000000e+00> : vector<8xf32>
    %63 = vector.multi_reduction <add>, %59, %cst_45 [1] : vector<8x8xf32> to vector<8xf32>
    %64 = vector.shape_cast %63 : vector<8xf32> to vector<8x1xf32>
    %65 = arith.addf %62, %64 : vector<8x1xf32>
    %c1_46 = arith.constant 1 : index
    %c0_47 = arith.constant 0 : index
    %c0_48 = arith.constant 0 : index
    %66 = vector.load %arg9[%c1_46, %c0_47, %c0_48] : memref<2x8x1xf32, #tpu.memory_space<vmem>>, vector<1x8x1xf32>
    %67 = vector.shape_cast %66 : vector<1x8x1xf32> to vector<8x1xf32>
    %68 = vector.shape_cast %65 : vector<8x1xf32> to vector<1x8x1xf32>
    tpu.vector_store %arg9[%c1_46, %c0_47, %c0_48], %68 {strides = array<i32>} : memref<2x8x1xf32, #tpu.memory_space<vmem>>, vector<1x8x1xf32>,
    %c0_49 = arith.constant 0 : index
    %c64_50 = arith.constant 64 : index
    %69 = vector.load %arg10[%c0_49, %c64_50] : memref<8x128xf32, #tpu.memory_space<vmem>>, vector<8x64xf32>
    %70 = vector.broadcast %56 : vector<8x1xf32> to vector<8x64xf32>
    %71 = arith.mulf %70, %69 : vector<8x64xf32>
    %72 = arith.truncf %59 : vector<8x8xf32> to vector<8x8xbf16>
    %cst_51 = arith.constant dense<0.000000e+00> : vector<8x64xf32>
    %73 = tpu.matmul %72, %48, %cst_51 {dimension_numbers = #tpu.dot_dimension_numbers<[1], [0], [0], [1], [0, 0, 1, 1], [], []>} : vector<8x8xbf16>, vector<8x64xbf16>, vector<8x64xf32> -> vector<8x64xf32>
    %74 = arith.addf %71, %73 : vector<8x64xf32>
    %c0_52 = arith.constant 0 : index
    %c64_53 = arith.constant 64 : index
    %75 = vector.load %arg10[%c0_52, %c64_53] : memref<8x128xf32, #tpu.memory_space<vmem>>, vector<8x64xf32>
    tpu.vector_store %arg10[%c0_52, %c64_53], %74 {strides = array<i32>} : memref<8x128xf32, #tpu.memory_space<vmem>>, vector<8x64xf32>,
    %c1_54 = arith.constant 1 : index
    %c0_55 = arith.constant 0 : index
    %c0_56 = arith.constant 0 : index
    %76 = vector.load %arg8[%c1_54, %c0_55, %c0_56] : memref<2x8x1xf32, #tpu.memory_space<vmem>>, vector<1x8x1xf32>
    %77 = vector.shape_cast %76 : vector<1x8x1xf32> to vector<8x1xf32>
    %78 = vector.shape_cast %54 : vector<8x1xf32> to vector<1x8x1xf32>
    tpu.vector_store %arg8[%c1_54, %c0_55, %c0_56], %78 {strides = array<i32>} : memref<2x8x1xf32, #tpu.memory_space<vmem>>, vector<1x8x1xf32>,
    %c0_i32_57 = arith.constant 0 : i32
    %79 = arith.cmpi eq, %arg3, %c0_i32_57 : i32
    %80 = arith.extui %79 : i1 to i32
    %c0_i32_58 = arith.constant 0 : i32
    %81 = arith.cmpi ne, %80, %c0_i32_58 : i32
    scf.if %81 {
      %c0_59 = arith.constant 0 : index
      %c0_60 = arith.constant 0 : index
      %82 = vector.load %arg10[%c0_59, %c0_60] : memref<8x128xf32, #tpu.memory_space<vmem>>, vector<8x64xf32>
      %c0_61 = arith.constant 0 : index
      %c0_62 = arith.constant 0 : index
      %c0_63 = arith.constant 0 : index
      %83 = vector.load %arg9[%c0_61, %c0_62, %c0_63] : memref<2x8x1xf32, #tpu.memory_space<vmem>>, vector<1x8x1xf32>
      %84 = vector.shape_cast %83 : vector<1x8x1xf32> to vector<8x1xf32>
      %85 = tpu.reciprocal %84 {approx = true} : vector<8x1xf32> -> vector<8x1xf32>
      %86 = vector.broadcast %85 : vector<8x1xf32> to vector<8x64xf32>
      %87 = arith.mulf %82, %86 : vector<8x64xf32>
      %c0_64 = arith.constant 0 : index
      %c64_65 = arith.constant 64 : index
      %88 = vector.load %arg10[%c0_64, %c64_65] : memref<8x128xf32, #tpu.memory_space<vmem>>, vector<8x64xf32>
      %c1_66 = arith.constant 1 : index
      %c0_67 = arith.constant 0 : index
      %c0_68 = arith.constant 0 : index
      %89 = vector.load %arg9[%c1_66, %c0_67, %c0_68] : memref<2x8x1xf32, #tpu.memory_space<vmem>>, vector<1x8x1xf32>
      %90 = vector.shape_cast %89 : vector<1x8x1xf32> to vector<8x1xf32>
      %91 = tpu.reciprocal %90 {approx = true} : vector<8x1xf32> -> vector<8x1xf32>
      %92 = vector.broadcast %91 : vector<8x1xf32> to vector<8x64xf32>
      %93 = arith.mulf %88, %92 : vector<8x64xf32>
      %94 = tpu.concatenate %87, %93 in 1 : vector<8x64xf32>, vector<8x64xf32> -> vector<8x128xf32>
      %95 = arith.truncf %94 : vector<8x128xf32> to vector<8x128xbf16>
      %c0_69 = arith.constant 0 : index
      %c0_70 = arith.constant 0 : index
      %c0_71 = arith.constant 0 : index
      %96 = vector.load %arg7[%c0_69, %c0_70, %c0_71] : memref<1x8x128xbf16, #tpu.memory_space<vmem>>, vector<1x8x128xbf16>
      %97 = vector.shape_cast %96 : vector<1x8x128xbf16> to vector<8x128xbf16>
      %98 = vector.shape_cast %95 : vector<8x128xbf16> to vector<1x8x128xbf16>
      tpu.vector_store %arg7[%c0_69, %c0_70, %c0_71], %98 {strides = array<i32>} : memref<1x8x128xbf16, #tpu.memory_space<vmem>>, vector<1x8x128xbf16>,
    } else {
    }
    return
  }
  func.func @transform_0(%arg0: i32, %arg1: i32, %arg2: i32, %arg3: i32) -> (i32, i32, i32) {
    %c0_i32 = arith.constant 0 : i32
    return %arg0, %arg2, %arg1 : i32, i32, i32
  }
  func.func @transform_1(%arg0: i32, %arg1: i32, %arg2: i32, %arg3: i32) -> (i32, i32, i32) {
    %c1_i32 = arith.constant 1 : i32
    %0 = arith.addi %c1_i32, %arg1 : i32
    %c0_i32 = arith.constant 0 : i32
    return %arg0, %arg3, %0 : i32, i32, i32
  }
  func.func @transform_2(%arg0: i32, %arg1: i32, %arg2: i32, %arg3: i32) -> (i32, i32, i32) {
    %c2_i32 = arith.constant 2 : i32
    %0 = arith.addi %c2_i32, %arg1 : i32
    %c0_i32 = arith.constant 0 : i32
    return %arg0, %arg3, %0 : i32, i32, i32
  }
  func.func @transform_3(%arg0: i32, %arg1: i32, %arg2: i32, %arg3: i32) -> (i32, i32, i32) {
    %c0_i32 = arith.constant 0 : i32
    return %arg0, %arg2, %arg1 : i32, i32, i32
  }
}

module attributes {stable_mosaic.version = 11 : i64} {
  func.func @kernel(%arg0: i32, %arg1: i32, %arg2: memref<16x128xbf16, #tpu.memory_space<vmem>>, %arg3: memref<128x256xbf16, #tpu.memory_space<vmem>>, %arg4: memref<1x256xf32, #tpu.memory_space<vmem>>, %arg5: memref<16x256xbf16, #tpu.memory_space<vmem>>) attributes {dimension_semantics = [#tpu.dimension_semantics<parallel>, #tpu.dimension_semantics<parallel>], iteration_bounds = array<i64: 1, 1>, scalar_prefetch = 0 : i64, scratch_operands = 0 : i64, tpu.core_type = #tpu.core_type<tc>, window_params = [{transform_indices = @transform_0, window_bounds = array<i64: 16, 128>}, {transform_indices = @transform_1, window_bounds = array<i64: 128, 256>}, {transform_indices = @transform_2, window_bounds = array<i64: 1, 256>}, {transform_indices = @transform_3, window_bounds = array<i64: 16, 256>}]} {
    %c0 = arith.constant 0 : index
    %c0_0 = arith.constant 0 : index
    %0 = vector.load %arg2[%c0, %c0_0] : memref<16x128xbf16, #tpu.memory_space<vmem>>, vector<16x128xbf16>
    %c0_1 = arith.constant 0 : index
    %c0_2 = arith.constant 0 : index
    %1 = vector.load %arg3[%c0_1, %c0_2] : memref<128x256xbf16, #tpu.memory_space<vmem>>, vector<128x256xbf16>
    %cst = arith.constant dense<0.000000e+00> : vector<16x256xf32>
    %2 = tpu.matmul %0, %1, %cst {dimension_numbers = #tpu.dot_dimension_numbers<[1], [0], [0], [1], [0, 0, 1, 1], [], []>} : vector<16x128xbf16>, vector<128x256xbf16>, vector<16x256xf32> -> vector<16x256xf32>
    %c0_3 = arith.constant 0 : index
    %c0_4 = arith.constant 0 : index
    %3 = vector.load %arg4[%c0_3, %c0_4] : memref<1x256xf32, #tpu.memory_space<vmem>>, vector<1x256xf32>
    %4 = vector.broadcast %3 : vector<1x256xf32> to vector<16x256xf32>
    %5 = arith.addf %2, %4 : vector<16x256xf32>
    %cst_5 = arith.constant 5.000000e-01 : f32
    %6 = vector.broadcast %cst_5 : f32 to vector<16x256xf32>
    %7 = arith.mulf %6, %5 : vector<16x256xf32>
    %cst_6 = arith.constant 4.471500e-02 : f32
    %8 = vector.broadcast %cst_6 : f32 to vector<16x256xf32>
    %9 = arith.mulf %8, %5 : vector<16x256xf32>
    %10 = arith.mulf %9, %5 : vector<16x256xf32>
    %11 = arith.mulf %10, %5 : vector<16x256xf32>
    %12 = arith.addf %5, %11 : vector<16x256xf32>
    %cst_7 = arith.constant 0.797884583 : f32
    %13 = vector.broadcast %cst_7 : f32 to vector<16x256xf32>
    %14 = arith.mulf %13, %12 : vector<16x256xf32>
    %15 = math.tanh %14 : vector<16x256xf32>
    %cst_8 = arith.constant 1.000000e+00 : f32
    %16 = vector.broadcast %cst_8 : f32 to vector<16x256xf32>
    %17 = arith.addf %16, %15 : vector<16x256xf32>
    %18 = arith.mulf %7, %17 : vector<16x256xf32>
    %19 = arith.truncf %18 : vector<16x256xf32> to vector<16x256xbf16>
    %c0_9 = arith.constant 0 : index
    %c0_10 = arith.constant 0 : index
    %20 = vector.load %arg5[%c0_9, %c0_10] : memref<16x256xbf16, #tpu.memory_space<vmem>>, vector<16x256xbf16>
    tpu.vector_store %arg5[%c0_9, %c0_10], %19 {strides = array<i32>} : memref<16x256xbf16, #tpu.memory_space<vmem>>, vector<16x256xbf16>,
    return
  }
  func.func @transform_0(%arg0: i32, %arg1: i32) -> (i32, i32) {
    %c0_i32 = arith.constant 0 : i32
    %c0_i32_0 = arith.constant 0 : i32
    return %arg0, %c0_i32 : i32, i32
  }
  func.func @transform_1(%arg0: i32, %arg1: i32) -> (i32, i32) {
    %c0_i32 = arith.constant 0 : i32
    %c0_i32_0 = arith.constant 0 : i32
    return %c0_i32, %arg1 : i32, i32
  }
  func.func @transform_2(%arg0: i32, %arg1: i32) -> (i32, i32) {
    %c0_i32 = arith.constant 0 : i32
    %c0_i32_0 = arith.constant 0 : i32
    return %c0_i32, %arg1 : i32, i32
  }
  func.func @transform_3(%arg0: i32, %arg1: i32) -> (i32, i32) {
    %c0_i32 = arith.constant 0 : i32
    return %arg0, %arg1 : i32, i32
  }
}

module attributes {stable_mosaic.version = 11 : i64} {
  func.func @kernel(%arg0: i32, %arg1: memref<2x128xbf16, #tpu.memory_space<vmem>>, %arg2: memref<128x128xbf16, #tpu.memory_space<vmem>>, %arg3: memref<1x128xf32, #tpu.memory_space<vmem>>, %arg4: memref<2x128xbf16, #tpu.memory_space<vmem>>, %arg5: memref<1x128xf32, #tpu.memory_space<vmem>>, %arg6: memref<1x128xf32, #tpu.memory_space<vmem>>, %arg7: memref<2x128xbf16, #tpu.memory_space<vmem>>) attributes {dimension_semantics = [#tpu.dimension_semantics<parallel>], iteration_bounds = array<i64: 1>, scalar_prefetch = 0 : i64, scratch_operands = 0 : i64, tpu.core_type = #tpu.core_type<tc>, window_params = [{transform_indices = @transform_0, window_bounds = array<i64: 2, 128>}, {pipeline_mode = #tpu.pipeline_mode<synchronous>, transform_indices = @transform_1, window_bounds = array<i64: 128, 128>}, {pipeline_mode = #tpu.pipeline_mode<synchronous>, transform_indices = @transform_2, window_bounds = array<i64: 1, 128>}, {transform_indices = @transform_3, window_bounds = array<i64: 2, 128>}, {pipeline_mode = #tpu.pipeline_mode<synchronous>, transform_indices = @transform_4, window_bounds = array<i64: 1, 128>}, {pipeline_mode = #tpu.pipeline_mode<synchronous>, transform_indices = @transform_5, window_bounds = array<i64: 1, 128>}, {transform_indices = @transform_6, window_bounds = array<i64: 2, 128>}]} {
    %c0 = arith.constant 0 : index
    %c0_0 = arith.constant 0 : index
    %0 = vector.load %arg1[%c0, %c0_0] : memref<2x128xbf16, #tpu.memory_space<vmem>>, vector<2x128xbf16>
    %c0_1 = arith.constant 0 : index
    %c0_2 = arith.constant 0 : index
    %1 = vector.load %arg2[%c0_1, %c0_2] : memref<128x128xbf16, #tpu.memory_space<vmem>>, vector<128x128xbf16>
    %cst = arith.constant dense<0.000000e+00> : vector<2x128xf32>
    %2 = tpu.matmul %0, %1, %cst {dimension_numbers = #tpu.dot_dimension_numbers<[1], [0], [0], [1], [0, 0, 1, 1], [], []>} : vector<2x128xbf16>, vector<128x128xbf16>, vector<2x128xf32> -> vector<2x128xf32>
    %c0_3 = arith.constant 0 : index
    %c0_4 = arith.constant 0 : index
    %3 = vector.load %arg3[%c0_3, %c0_4] : memref<1x128xf32, #tpu.memory_space<vmem>>, vector<1x128xf32>
    %4 = vector.broadcast %3 : vector<1x128xf32> to vector<2x128xf32>
    %5 = arith.addf %2, %4 : vector<2x128xf32>
    %c0_5 = arith.constant 0 : index
    %c0_6 = arith.constant 0 : index
    %6 = vector.load %arg4[%c0_5, %c0_6] : memref<2x128xbf16, #tpu.memory_space<vmem>>, vector<2x128xbf16>
    %7 = arith.extf %6 : vector<2x128xbf16> to vector<2x128xf32>
    %8 = arith.addf %5, %7 : vector<2x128xf32>
    %cst_7 = arith.constant dense<0.000000e+00> : vector<2xf32>
    %9 = vector.multi_reduction <add>, %8, %cst_7 [1] : vector<2x128xf32> to vector<2xf32>
    %10 = vector.shape_cast %9 : vector<2xf32> to vector<2x1xf32>
    %cst_8 = arith.constant 1.280000e+02 : f32
    %11 = vector.broadcast %cst_8 : f32 to vector<2x1xf32>
    %12 = arith.divf %10, %11 : vector<2x1xf32>
    %13 = vector.broadcast %12 : vector<2x1xf32> to vector<2x128xf32>
    %14 = arith.subf %8, %13 : vector<2x128xf32>
    %15 = arith.mulf %14, %14 : vector<2x128xf32>
    %cst_9 = arith.constant dense<0.000000e+00> : vector<2xf32>
    %16 = vector.multi_reduction <add>, %15, %cst_9 [1] : vector<2x128xf32> to vector<2xf32>
    %17 = vector.shape_cast %16 : vector<2xf32> to vector<2x1xf32>
    %cst_10 = arith.constant 1.280000e+02 : f32
    %18 = vector.broadcast %cst_10 : f32 to vector<2x1xf32>
    %19 = arith.divf %17, %18 : vector<2x1xf32>
    %20 = vector.broadcast %12 : vector<2x1xf32> to vector<2x128xf32>
    %21 = arith.subf %8, %20 : vector<2x128xf32>
    %cst_11 = arith.constant 9.99999996E-13 : f32
    %22 = vector.broadcast %cst_11 : f32 to vector<2x1xf32>
    %23 = arith.addf %19, %22 : vector<2x1xf32>
    %24 = math.rsqrt %23 : vector<2x1xf32>
    %25 = vector.broadcast %24 : vector<2x1xf32> to vector<2x128xf32>
    %26 = arith.mulf %21, %25 : vector<2x128xf32>
    %c0_12 = arith.constant 0 : index
    %c0_13 = arith.constant 0 : index
    %27 = vector.load %arg5[%c0_12, %c0_13] : memref<1x128xf32, #tpu.memory_space<vmem>>, vector<1x128xf32>
    %28 = vector.broadcast %27 : vector<1x128xf32> to vector<2x128xf32>
    %29 = arith.mulf %26, %28 : vector<2x128xf32>
    %c0_14 = arith.constant 0 : index
    %c0_15 = arith.constant 0 : index
    %30 = vector.load %arg6[%c0_14, %c0_15] : memref<1x128xf32, #tpu.memory_space<vmem>>, vector<1x128xf32>
    %31 = vector.broadcast %30 : vector<1x128xf32> to vector<2x128xf32>
    %32 = arith.addf %29, %31 : vector<2x128xf32>
    %33 = arith.truncf %32 : vector<2x128xf32> to vector<2x128xbf16>
    %c0_16 = arith.constant 0 : index
    %c0_17 = arith.constant 0 : index
    %34 = vector.load %arg7[%c0_16, %c0_17] : memref<2x128xbf16, #tpu.memory_space<vmem>>, vector<2x128xbf16>
    tpu.vector_store %arg7[%c0_16, %c0_17], %33 {strides = array<i32>} : memref<2x128xbf16, #tpu.memory_space<vmem>>, vector<2x128xbf16>,
    return
  }
  func.func @transform_0(%arg0: i32) -> (i32, i32) {
    %c0_i32 = arith.constant 0 : i32
    %c0_i32_0 = arith.constant 0 : i32
    return %arg0, %c0_i32 : i32, i32
  }
  func.func @transform_1(%arg0: i32) -> (i32, i32) {
    %c0_i32 = arith.constant 0 : i32
    %c0_i32_0 = arith.constant 0 : i32
    %c0_i32_1 = arith.constant 0 : i32
    return %c0_i32, %c0_i32_0 : i32, i32
  }
  func.func @transform_2(%arg0: i32) -> (i32, i32) {
    %c0_i32 = arith.constant 0 : i32
    %c0_i32_0 = arith.constant 0 : i32
    %c0_i32_1 = arith.constant 0 : i32
    return %c0_i32, %c0_i32_0 : i32, i32
  }
  func.func @transform_3(%arg0: i32) -> (i32, i32) {
    %c0_i32 = arith.constant 0 : i32
    %c0_i32_0 = arith.constant 0 : i32
    return %arg0, %c0_i32 : i32, i32
  }
  func.func @transform_4(%arg0: i32) -> (i32, i32) {
    %c0_i32 = arith.constant 0 : i32
    %c0_i32_0 = arith.constant 0 : i32
    %c0_i32_1 = arith.constant 0 : i32
    return %c0_i32, %c0_i32_0 : i32, i32
  }
  func.func @transform_5(%arg0: i32) -> (i32, i32) {
    %c0_i32 = arith.constant 0 : i32
    %c0_i32_0 = arith.constant 0 : i32
    %c0_i32_1 = arith.constant 0 : i32
    return %c0_i32, %c0_i32_0 : i32, i32
  }
  func.func @transform_6(%arg0: i32) -> (i32, i32) {
    %c0_i32 = arith.constant 0 : i32
    %c0_i32_0 = arith.constant 0 : i32
    return %arg0, %c0_i32 : i32, i32
  }
}

module attributes {stable_mosaic.version = 11 : i64} {
  func.func @kernel(%arg0: i32, %arg1: memref<16x256xbf16, #tpu.memory_space<vmem>>, %arg2: memref<256x128xbf16, #tpu.memory_space<vmem>>, %arg3: memref<1x128xf32, #tpu.memory_space<vmem>>, %arg4: memref<16x128xbf16, #tpu.memory_space<vmem>>, %arg5: memref<1x128xf32, #tpu.memory_space<vmem>>, %arg6: memref<1x128xf32, #tpu.memory_space<vmem>>, %arg7: memref<16x128xbf16, #tpu.memory_space<vmem>>) attributes {dimension_semantics = [#tpu.dimension_semantics<parallel>], iteration_bounds = array<i64: 1>, scalar_prefetch = 0 : i64, scratch_operands = 0 : i64, tpu.core_type = #tpu.core_type<tc>, window_params = [{transform_indices = @transform_0, window_bounds = array<i64: 16, 256>}, {pipeline_mode = #tpu.pipeline_mode<synchronous>, transform_indices = @transform_1, window_bounds = array<i64: 256, 128>}, {pipeline_mode = #tpu.pipeline_mode<synchronous>, transform_indices = @transform_2, window_bounds = array<i64: 1, 128>}, {transform_indices = @transform_3, window_bounds = array<i64: 16, 128>}, {pipeline_mode = #tpu.pipeline_mode<synchronous>, transform_indices = @transform_4, window_bounds = array<i64: 1, 128>}, {pipeline_mode = #tpu.pipeline_mode<synchronous>, transform_indices = @transform_5, window_bounds = array<i64: 1, 128>}, {transform_indices = @transform_6, window_bounds = array<i64: 16, 128>}]} {
    %c0 = arith.constant 0 : index
    %c0_0 = arith.constant 0 : index
    %0 = vector.load %arg1[%c0, %c0_0] : memref<16x256xbf16, #tpu.memory_space<vmem>>, vector<16x256xbf16>
    %c0_1 = arith.constant 0 : index
    %c0_2 = arith.constant 0 : index
    %1 = vector.load %arg2[%c0_1, %c0_2] : memref<256x128xbf16, #tpu.memory_space<vmem>>, vector<256x128xbf16>
    %cst = arith.constant dense<0.000000e+00> : vector<16x128xf32>
    %2 = tpu.matmul %0, %1, %cst {dimension_numbers = #tpu.dot_dimension_numbers<[1], [0], [0], [1], [0, 0, 1, 1], [], []>} : vector<16x256xbf16>, vector<256x128xbf16>, vector<16x128xf32> -> vector<16x128xf32>
    %c0_3 = arith.constant 0 : index
    %c0_4 = arith.constant 0 : index
    %3 = vector.load %arg3[%c0_3, %c0_4] : memref<1x128xf32, #tpu.memory_space<vmem>>, vector<1x128xf32>
    %4 = vector.broadcast %3 : vector<1x128xf32> to vector<16x128xf32>
    %5 = arith.addf %2, %4 : vector<16x128xf32>
    %c0_5 = arith.constant 0 : index
    %c0_6 = arith.constant 0 : index
    %6 = vector.load %arg4[%c0_5, %c0_6] : memref<16x128xbf16, #tpu.memory_space<vmem>>, vector<16x128xbf16>
    %7 = arith.extf %6 : vector<16x128xbf16> to vector<16x128xf32>
    %8 = arith.addf %5, %7 : vector<16x128xf32>
    %cst_7 = arith.constant dense<0.000000e+00> : vector<16xf32>
    %9 = vector.multi_reduction <add>, %8, %cst_7 [1] : vector<16x128xf32> to vector<16xf32>
    %10 = vector.shape_cast %9 : vector<16xf32> to vector<16x1xf32>
    %cst_8 = arith.constant 1.280000e+02 : f32
    %11 = vector.broadcast %cst_8 : f32 to vector<16x1xf32>
    %12 = arith.divf %10, %11 : vector<16x1xf32>
    %13 = vector.broadcast %12 : vector<16x1xf32> to vector<16x128xf32>
    %14 = arith.subf %8, %13 : vector<16x128xf32>
    %15 = arith.mulf %14, %14 : vector<16x128xf32>
    %cst_9 = arith.constant dense<0.000000e+00> : vector<16xf32>
    %16 = vector.multi_reduction <add>, %15, %cst_9 [1] : vector<16x128xf32> to vector<16xf32>
    %17 = vector.shape_cast %16 : vector<16xf32> to vector<16x1xf32>
    %cst_10 = arith.constant 1.280000e+02 : f32
    %18 = vector.broadcast %cst_10 : f32 to vector<16x1xf32>
    %19 = arith.divf %17, %18 : vector<16x1xf32>
    %20 = vector.broadcast %12 : vector<16x1xf32> to vector<16x128xf32>
    %21 = arith.subf %8, %20 : vector<16x128xf32>
    %cst_11 = arith.constant 9.99999996E-13 : f32
    %22 = vector.broadcast %cst_11 : f32 to vector<16x1xf32>
    %23 = arith.addf %19, %22 : vector<16x1xf32>
    %24 = math.rsqrt %23 : vector<16x1xf32>
    %25 = vector.broadcast %24 : vector<16x1xf32> to vector<16x128xf32>
    %26 = arith.mulf %21, %25 : vector<16x128xf32>
    %c0_12 = arith.constant 0 : index
    %c0_13 = arith.constant 0 : index
    %27 = vector.load %arg5[%c0_12, %c0_13] : memref<1x128xf32, #tpu.memory_space<vmem>>, vector<1x128xf32>
    %28 = vector.broadcast %27 : vector<1x128xf32> to vector<16x128xf32>
    %29 = arith.mulf %26, %28 : vector<16x128xf32>
    %c0_14 = arith.constant 0 : index
    %c0_15 = arith.constant 0 : index
    %30 = vector.load %arg6[%c0_14, %c0_15] : memref<1x128xf32, #tpu.memory_space<vmem>>, vector<1x128xf32>
    %31 = vector.broadcast %30 : vector<1x128xf32> to vector<16x128xf32>
    %32 = arith.addf %29, %31 : vector<16x128xf32>
    %33 = arith.truncf %32 : vector<16x128xf32> to vector<16x128xbf16>
    %c0_16 = arith.constant 0 : index
    %c0_17 = arith.constant 0 : index
    %34 = vector.load %arg7[%c0_16, %c0_17] : memref<16x128xbf16, #tpu.memory_space<vmem>>, vector<16x128xbf16>
    tpu.vector_store %arg7[%c0_16, %c0_17], %33 {strides = array<i32>} : memref<16x128xbf16, #tpu.memory_space<vmem>>, vector<16x128xbf16>,
    return
  }
  func.func @transform_0(%arg0: i32) -> (i32, i32) {
    %c0_i32 = arith.constant 0 : i32
    %c0_i32_0 = arith.constant 0 : i32
    return %arg0, %c0_i32 : i32, i32
  }
  func.func @transform_1(%arg0: i32) -> (i32, i32) {
    %c0_i32 = arith.constant 0 : i32
    %c0_i32_0 = arith.constant 0 : i32
    %c0_i32_1 = arith.constant 0 : i32
    return %c0_i32, %c0_i32_0 : i32, i32
  }
  func.func @transform_2(%arg0: i32) -> (i32, i32) {
    %c0_i32 = arith.constant 0 : i32
    %c0_i32_0 = arith.constant 0 : i32
    %c0_i32_1 = arith.constant 0 : i32
    return %c0_i32, %c0_i32_0 : i32, i32
  }
  func.func @transform_3(%arg0: i32) -> (i32, i32) {
    %c0_i32 = arith.constant 0 : i32
    %c0_i32_0 = arith.constant 0 : i32
    return %arg0, %c0_i32 : i32, i32
  }
  func.func @transform_4(%arg0: i32) -> (i32, i32) {
    %c0_i32 = arith.constant 0 : i32
    %c0_i32_0 = arith.constant 0 : i32
    %c0_i32_1 = arith.constant 0 : i32
    return %c0_i32, %c0_i32_0 : i32, i32
  }
  func.func @transform_5(%arg0: i32) -> (i32, i32) {
    %c0_i32 = arith.constant 0 : i32
    %c0_i32_0 = arith.constant 0 : i32
    %c0_i32_1 = arith.constant 0 : i32
    return %c0_i32, %c0_i32_0 : i32, i32
  }
  func.func @transform_6(%arg0: i32) -> (i32, i32) {
    %c0_i32 = arith.constant 0 : i32
    %c0_i32_0 = arith.constant 0 : i32
    return %arg0, %c0_i32 : i32, i32
  }
}

module attributes {stable_mosaic.version = 11 : i64} {
  func.func @kernel(%arg0: i32, %arg1: i32, %arg2: memref<2x128xbf16, #tpu.memory_space<vmem>>, %arg3: memref<128x256xbf16, #tpu.memory_space<vmem>>, %arg4: memref<1x256xf32, #tpu.memory_space<vmem>>, %arg5: memref<2x256xbf16, #tpu.memory_space<vmem>>) attributes {dimension_semantics = [#tpu.dimension_semantics<parallel>, #tpu.dimension_semantics<parallel>], iteration_bounds = array<i64: 1, 1>, scalar_prefetch = 0 : i64, scratch_operands = 0 : i64, tpu.core_type = #tpu.core_type<tc>, window_params = [{transform_indices = @transform_0, window_bounds = array<i64: 2, 128>}, {transform_indices = @transform_1, window_bounds = array<i64: 128, 256>}, {transform_indices = @transform_2, window_bounds = array<i64: 1, 256>}, {transform_indices = @transform_3, window_bounds = array<i64: 2, 256>}]} {
    %c0 = arith.constant 0 : index
    %c0_0 = arith.constant 0 : index
    %0 = vector.load %arg2[%c0, %c0_0] : memref<2x128xbf16, #tpu.memory_space<vmem>>, vector<2x128xbf16>
    %c0_1 = arith.constant 0 : index
    %c0_2 = arith.constant 0 : index
    %1 = vector.load %arg3[%c0_1, %c0_2] : memref<128x256xbf16, #tpu.memory_space<vmem>>, vector<128x256xbf16>
    %cst = arith.constant dense<0.000000e+00> : vector<2x256xf32>
    %2 = tpu.matmul %0, %1, %cst {dimension_numbers = #tpu.dot_dimension_numbers<[1], [0], [0], [1], [0, 0, 1, 1], [], []>} : vector<2x128xbf16>, vector<128x256xbf16>, vector<2x256xf32> -> vector<2x256xf32>
    %c0_3 = arith.constant 0 : index
    %c0_4 = arith.constant 0 : index
    %3 = vector.load %arg4[%c0_3, %c0_4] : memref<1x256xf32, #tpu.memory_space<vmem>>, vector<1x256xf32>
    %4 = vector.broadcast %3 : vector<1x256xf32> to vector<2x256xf32>
    %5 = arith.addf %2, %4 : vector<2x256xf32>
    %cst_5 = arith.constant 5.000000e-01 : f32
    %6 = vector.broadcast %cst_5 : f32 to vector<2x256xf32>
    %7 = arith.mulf %6, %5 : vector<2x256xf32>
    %cst_6 = arith.constant 4.471500e-02 : f32
    %8 = vector.broadcast %cst_6 : f32 to vector<2x256xf32>
    %9 = arith.mulf %8, %5 : vector<2x256xf32>
    %10 = arith.mulf %9, %5 : vector<2x256xf32>
    %11 = arith.mulf %10, %5 : vector<2x256xf32>
    %12 = arith.addf %5, %11 : vector<2x256xf32>
    %cst_7 = arith.constant 0.797884583 : f32
    %13 = vector.broadcast %cst_7 : f32 to vector<2x256xf32>
    %14 = arith.mulf %13, %12 : vector<2x256xf32>
    %15 = math.tanh %14 : vector<2x256xf32>
    %cst_8 = arith.constant 1.000000e+00 : f32
    %16 = vector.broadcast %cst_8 : f32 to vector<2x256xf32>
    %17 = arith.addf %16, %15 : vector<2x256xf32>
    %18 = arith.mulf %7, %17 : vector<2x256xf32>
    %19 = arith.truncf %18 : vector<2x256xf32> to vector<2x256xbf16>
    %c0_9 = arith.constant 0 : index
    %c0_10 = arith.constant 0 : index
    %20 = vector.load %arg5[%c0_9, %c0_10] : memref<2x256xbf16, #tpu.memory_space<vmem>>, vector<2x256xbf16>
    tpu.vector_store %arg5[%c0_9, %c0_10], %19 {strides = array<i32>} : memref<2x256xbf16, #tpu.memory_space<vmem>>, vector<2x256xbf16>,
    return
  }
  func.func @transform_0(%arg0: i32, %arg1: i32) -> (i32, i32) {
    %c0_i32 = arith.constant 0 : i32
    %c0_i32_0 = arith.constant 0 : i32
    return %arg0, %c0_i32 : i32, i32
  }
  func.func @transform_1(%arg0: i32, %arg1: i32) -> (i32, i32) {
    %c0_i32 = arith.constant 0 : i32
    %c0_i32_0 = arith.constant 0 : i32
    return %c0_i32, %arg1 : i32, i32
  }
  func.func @transform_2(%arg0: i32, %arg1: i32) -> (i32, i32) {
    %c0_i32 = arith.constant 0 : i32
    %c0_i32_0 = arith.constant 0 : i32
    return %c0_i32, %arg1 : i32, i32
  }
  func.func @transform_3(%arg0: i32, %arg1: i32) -> (i32, i32) {
    %c0_i32 = arith.constant 0 : i32
    return %arg0, %arg1 : i32, i32
  }
}

module attributes {stable_mosaic.version = 11 : i64} {
  func.func @kernel(%arg0: i32, %arg1: memref<2x256xbf16, #tpu.memory_space<vmem>>, %arg2: memref<256x128xbf16, #tpu.memory_space<vmem>>, %arg3: memref<1x128xf32, #tpu.memory_space<vmem>>, %arg4: memref<2x128xbf16, #tpu.memory_space<vmem>>, %arg5: memref<1x128xf32, #tpu.memory_space<vmem>>, %arg6: memref<1x128xf32, #tpu.memory_space<vmem>>, %arg7: memref<2x128xbf16, #tpu.memory_space<vmem>>) attributes {dimension_semantics = [#tpu.dimension_semantics<parallel>], iteration_bounds = array<i64: 1>, scalar_prefetch = 0 : i64, scratch_operands = 0 : i64, tpu.core_type = #tpu.core_type<tc>, window_params = [{transform_indices = @transform_0, window_bounds = array<i64: 2, 256>}, {pipeline_mode = #tpu.pipeline_mode<synchronous>, transform_indices = @transform_1, window_bounds = array<i64: 256, 128>}, {pipeline_mode = #tpu.pipeline_mode<synchronous>, transform_indices = @transform_2, window_bounds = array<i64: 1, 128>}, {transform_indices = @transform_3, window_bounds = array<i64: 2, 128>}, {pipeline_mode = #tpu.pipeline_mode<synchronous>, transform_indices = @transform_4, window_bounds = array<i64: 1, 128>}, {pipeline_mode = #tpu.pipeline_mode<synchronous>, transform_indices = @transform_5, window_bounds = array<i64: 1, 128>}, {transform_indices = @transform_6, window_bounds = array<i64: 2, 128>}]} {
    %c0 = arith.constant 0 : index
    %c0_0 = arith.constant 0 : index
    %0 = vector.load %arg1[%c0, %c0_0] : memref<2x256xbf16, #tpu.memory_space<vmem>>, vector<2x256xbf16>
    %c0_1 = arith.constant 0 : index
    %c0_2 = arith.constant 0 : index
    %1 = vector.load %arg2[%c0_1, %c0_2] : memref<256x128xbf16, #tpu.memory_space<vmem>>, vector<256x128xbf16>
    %cst = arith.constant dense<0.000000e+00> : vector<2x128xf32>
    %2 = tpu.matmul %0, %1, %cst {dimension_numbers = #tpu.dot_dimension_numbers<[1], [0], [0], [1], [0, 0, 1, 1], [], []>} : vector<2x256xbf16>, vector<256x128xbf16>, vector<2x128xf32> -> vector<2x128xf32>
    %c0_3 = arith.constant 0 : index
    %c0_4 = arith.constant 0 : index
    %3 = vector.load %arg3[%c0_3, %c0_4] : memref<1x128xf32, #tpu.memory_space<vmem>>, vector<1x128xf32>
    %4 = vector.broadcast %3 : vector<1x128xf32> to vector<2x128xf32>
    %5 = arith.addf %2, %4 : vector<2x128xf32>
    %c0_5 = arith.constant 0 : index
    %c0_6 = arith.constant 0 : index
    %6 = vector.load %arg4[%c0_5, %c0_6] : memref<2x128xbf16, #tpu.memory_space<vmem>>, vector<2x128xbf16>
    %7 = arith.extf %6 : vector<2x128xbf16> to vector<2x128xf32>
    %8 = arith.addf %5, %7 : vector<2x128xf32>
    %cst_7 = arith.constant dense<0.000000e+00> : vector<2xf32>
    %9 = vector.multi_reduction <add>, %8, %cst_7 [1] : vector<2x128xf32> to vector<2xf32>
    %10 = vector.shape_cast %9 : vector<2xf32> to vector<2x1xf32>
    %cst_8 = arith.constant 1.280000e+02 : f32
    %11 = vector.broadcast %cst_8 : f32 to vector<2x1xf32>
    %12 = arith.divf %10, %11 : vector<2x1xf32>
    %13 = vector.broadcast %12 : vector<2x1xf32> to vector<2x128xf32>
    %14 = arith.subf %8, %13 : vector<2x128xf32>
    %15 = arith.mulf %14, %14 : vector<2x128xf32>
    %cst_9 = arith.constant dense<0.000000e+00> : vector<2xf32>
    %16 = vector.multi_reduction <add>, %15, %cst_9 [1] : vector<2x128xf32> to vector<2xf32>
    %17 = vector.shape_cast %16 : vector<2xf32> to vector<2x1xf32>
    %cst_10 = arith.constant 1.280000e+02 : f32
    %18 = vector.broadcast %cst_10 : f32 to vector<2x1xf32>
    %19 = arith.divf %17, %18 : vector<2x1xf32>
    %20 = vector.broadcast %12 : vector<2x1xf32> to vector<2x128xf32>
    %21 = arith.subf %8, %20 : vector<2x128xf32>
    %cst_11 = arith.constant 9.99999996E-13 : f32
    %22 = vector.broadcast %cst_11 : f32 to vector<2x1xf32>
    %23 = arith.addf %19, %22 : vector<2x1xf32>
    %24 = math.rsqrt %23 : vector<2x1xf32>
    %25 = vector.broadcast %24 : vector<2x1xf32> to vector<2x128xf32>
    %26 = arith.mulf %21, %25 : vector<2x128xf32>
    %c0_12 = arith.constant 0 : index
    %c0_13 = arith.constant 0 : index
    %27 = vector.load %arg5[%c0_12, %c0_13] : memref<1x128xf32, #tpu.memory_space<vmem>>, vector<1x128xf32>
    %28 = vector.broadcast %27 : vector<1x128xf32> to vector<2x128xf32>
    %29 = arith.mulf %26, %28 : vector<2x128xf32>
    %c0_14 = arith.constant 0 : index
    %c0_15 = arith.constant 0 : index
    %30 = vector.load %arg6[%c0_14, %c0_15] : memref<1x128xf32, #tpu.memory_space<vmem>>, vector<1x128xf32>
    %31 = vector.broadcast %30 : vector<1x128xf32> to vector<2x128xf32>
    %32 = arith.addf %29, %31 : vector<2x128xf32>
    %33 = arith.truncf %32 : vector<2x128xf32> to vector<2x128xbf16>
    %c0_16 = arith.constant 0 : index
    %c0_17 = arith.constant 0 : index
    %34 = vector.load %arg7[%c0_16, %c0_17] : memref<2x128xbf16, #tpu.memory_space<vmem>>, vector<2x128xbf16>
    tpu.vector_store %arg7[%c0_16, %c0_17], %33 {strides = array<i32>} : memref<2x128xbf16, #tpu.memory_space<vmem>>, vector<2x128xbf16>,
    return
  }
  func.func @transform_0(%arg0: i32) -> (i32, i32) {
    %c0_i32 = arith.constant 0 : i32
    %c0_i32_0 = arith.constant 0 : i32
    return %arg0, %c0_i32 : i32, i32
  }
  func.func @transform_1(%arg0: i32) -> (i32, i32) {
    %c0_i32 = arith.constant 0 : i32
    %c0_i32_0 = arith.constant 0 : i32
    %c0_i32_1 = arith.constant 0 : i32
    return %c0_i32, %c0_i32_0 : i32, i32
  }
  func.func @transform_2(%arg0: i32) -> (i32, i32) {
    %c0_i32 = arith.constant 0 : i32
    %c0_i32_0 = arith.constant 0 : i32
    %c0_i32_1 = arith.constant 0 : i32
    return %c0_i32, %c0_i32_0 : i32, i32
  }
  func.func @transform_3(%arg0: i32) -> (i32, i32) {
    %c0_i32 = arith.constant 0 : i32
    %c0_i32_0 = arith.constant 0 : i32
    return %arg0, %c0_i32 : i32, i32
  }
  func.func @transform_4(%arg0: i32) -> (i32, i32) {
    %c0_i32 = arith.constant 0 : i32
    %c0_i32_0 = arith.constant 0 : i32
    %c0_i32_1 = arith.constant 0 : i32
    return %c0_i32, %c0_i32_0 : i32, i32
  }
  func.func @transform_5(%arg0: i32) -> (i32, i32) {
    %c0_i32 = arith.constant 0 : i32
    %c0_i32_0 = arith.constant 0 : i32
    %c0_i32_1 = arith.constant 0 : i32
    return %c0_i32, %c0_i32_0 : i32, i32
  }
  func.func @transform_6(%arg0: i32) -> (i32, i32) {
    %c0_i32 = arith.constant 0 : i32
    %c0_i32_0 = arith.constant 0 : i32
    return %arg0, %c0_i32 : i32, i32
  }
}

module attributes {stable_mosaic.version = 11 : i64} {
  func.func @kernel(%arg0: i32, %arg1: memref<2x128xbf16, #tpu.memory_space<vmem>>, %arg2: memref<128x128xbf16, #tpu.memory_space<vmem>>, %arg3: memref<1x128xf32, #tpu.memory_space<vmem>>, %arg4: memref<2x128xf32, #tpu.memory_space<vmem>>) attributes {dimension_semantics = [#tpu.dimension_semantics<arbitrary>], iteration_bounds = array<i64: 1>, scalar_prefetch = 0 : i64, scratch_operands = 0 : i64, tpu.core_type = #tpu.core_type<tc>, window_params = [{pipeline_mode = #tpu.pipeline_mode<synchronous>, transform_indices = @transform_0, window_bounds = array<i64: 2, 128>}, {pipeline_mode = #tpu.pipeline_mode<synchronous>, transform_indices = @transform_1, window_bounds = array<i64: 128, 128>}, {pipeline_mode = #tpu.pipeline_mode<synchronous>, transform_indices = @transform_2, window_bounds = array<i64: 1, 128>}, {pipeline_mode = #tpu.pipeline_mode<synchronous>, transform_indices = @transform_3, window_bounds = array<i64: 2, 128>}]} {
    %c0 = arith.constant 0 : index
    %c0_0 = arith.constant 0 : index
    %0 = vector.load %arg1[%c0, %c0_0] : memref<2x128xbf16, #tpu.memory_space<vmem>>, vector<2x128xbf16>
    %c0_1 = arith.constant 0 : index
    %c0_2 = arith.constant 0 : index
    %1 = vector.load %arg2[%c0_1, %c0_2] : memref<128x128xbf16, #tpu.memory_space<vmem>>, vector<128x128xbf16>
    %cst = arith.constant dense<0.000000e+00> : vector<2x128xf32>
    %2 = tpu.matmul %0, %1, %cst {dimension_numbers = #tpu.dot_dimension_numbers<[1], [0], [0], [1], [0, 0, 1, 1], [], []>} : vector<2x128xbf16>, vector<128x128xbf16>, vector<2x128xf32> -> vector<2x128xf32>
    %c0_3 = arith.constant 0 : index
    %c0_4 = arith.constant 0 : index
    %3 = vector.load %arg3[%c0_3, %c0_4] : memref<1x128xf32, #tpu.memory_space<vmem>>, vector<1x128xf32>
    %4 = vector.broadcast %3 : vector<1x128xf32> to vector<2x128xf32>
    %5 = arith.addf %2, %4 : vector<2x128xf32>
    %cst_5 = arith.constant 0.000000e+00 : f32
    %6 = vector.broadcast %cst_5 : f32 to vector<2x128xf32>
    %7 = arith.subf %6, %5 : vector<2x128xf32>
    %8 = math.exp %7 : vector<2x128xf32>
    %cst_6 = arith.constant 1.000000e+00 : f32
    %9 = vector.broadcast %cst_6 : f32 to vector<2x128xf32>
    %10 = arith.addf %9, %8 : vector<2x128xf32>
    %cst_7 = arith.constant 1.000000e+00 : f32
    %11 = vector.broadcast %cst_7 : f32 to vector<2x128xf32>
    %12 = arith.divf %11, %10 : vector<2x128xf32>
    %c0_8 = arith.constant 0 : index
    %c0_9 = arith.constant 0 : index
    %13 = vector.load %arg4[%c0_8, %c0_9] : memref<2x128xf32, #tpu.memory_space<vmem>>, vector<2x128xf32>
    tpu.vector_store %arg4[%c0_8, %c0_9], %12 {strides = array<i32>} : memref<2x128xf32, #tpu.memory_space<vmem>>, vector<2x128xf32>,
    return
  }
  func.func @transform_0(%arg0: i32) -> (i32, i32) {
    %c0_i32 = arith.constant 0 : i32
    %c0_i32_0 = arith.constant 0 : i32
    %c0_i32_1 = arith.constant 0 : i32
    return %c0_i32, %c0_i32_0 : i32, i32
  }
  func.func @transform_1(%arg0: i32) -> (i32, i32) {
    %c0_i32 = arith.constant 0 : i32
    %c0_i32_0 = arith.constant 0 : i32
    %c0_i32_1 = arith.constant 0 : i32
    return %c0_i32, %c0_i32_0 : i32, i32
  }
  func.func @transform_2(%arg0: i32) -> (i32, i32) {
    %c0_i32 = arith.constant 0 : i32
    %c0_i32_0 = arith.constant 0 : i32
    %c0_i32_1 = arith.constant 0 : i32
    return %c0_i32, %c0_i32_0 : i32, i32
  }
  func.func @transform_3(%arg0: i32) -> (i32, i32) {
    %c0_i32 = arith.constant 0 : i32
    %c0_i32_0 = arith.constant 0 : i32
    %c0_i32_1 = arith.constant 0 : i32
    return %c0_i32, %c0_i32_0 : i32, i32
  }
}

</mosaic_0001>

<bundles_post_ra>
// kernel: rc_model_forward.12
= control target key start
LH: loop header
LB: loop body
LE: loop exit
PB: predicated region body
PF: predicated region fallthrough
CT: control target
= control target key end

     0   :  { %s121_s0 = inlined_call_operand.vmem [shape: f32[16,128], index: 0, kind: input, shape index: {}]   ;;  %s122_s1 = inlined_call_operand.vmem [shape: f32[1,128], index: 1, kind: input, shape index: {}]   ;;  %s123_s2 = inlined_call_operand.vmem [shape: f32[1,128], index: 2, kind: input, shape index: {}]   ;;  %s124_s3 = inlined_call_operand.vmem [shape: bf16[16,128], index: 3, kind: output, shape index: {}]  }
   0x1   :  { %v14_v0 = vld [vmem:[%s121_s0] sm:$0xff]  ;;  %v15_v1 = vld [vmem:[%s121_s0 + $0x8] sm:$0xff] }
   0x2   :  { %16 = vadd.xlane.f32.xlu0 %v14_v0  ;;  %v71_v18 = vld [vmem:[%s122_s1] ss:$0 sm:$0xff] }
   0x3   :  { %v72_v22 = vld [vmem:[%s123_s2] ss:$0 sm:$0xff] }
   0x6   :  { %18 = vadd.xlane.f32.xlu0 %v15_v1 }
  0x8f   :  { %v17_v2 = vpop.xlane.xlu0 %16 }
  0x90   :  { %v21_v3 = vmul.f32 0.0078125, %v17_v2 }
  0x92   :  { %v23_v4 = vsub.f32 %v14_v0, %v21_v3 }
  0x93   :  { %v19_v5 = vpop.xlane.xlu0 %18 }
  0x94   :  { %v22_v6 = vmul.f32 0.0078125, %v19_v5  ;;  %v25_v7 = vmul.f32 %v23_v4, %v23_v4 }
  0x96   :  { %v24_v8 = vsub.f32 %v15_v1, %v22_v6  ;;  %27 = vadd.xlane.f32.xlu1 %v25_v7 }
  0x98   :  { %v26_v9 = vmul.f32 %v24_v8, %v24_v8 }
  0x9a   :  { %29 = vadd.xlane.f32.xlu1 %v26_v9 }
 0x123   :  { %v28_v10 = vpop.xlane.xlu1 %27 }
 0x124   :  { %v31_v11 = vmul.f32 0.0078125, %v28_v10 }
 0x126   :  { %v33_v12 = vadd.f32 1e-12, %v31_v11 }
 0x127   :  { %v30_v13 = vpop.xlane.xlu1 %29 }
 0x128   :  { %82 = vrsqrt.f32 %v33_v12  ;;  %v32_v14 = vmul.f32 0.0078125, %v30_v13 }
 0x12a   :  { %v34_v15 = vadd.f32 1e-12, %v32_v14 }
 0x12c   :  { %84 = vrsqrt.f32 %v34_v15 }
 0x132   :  { %v83_v16 = vpop.eup %82 }
 0x133   :  { %v37_v17 = vmul.f32 %v83_v16, %v23_v4 }
 0x135   :  { %v46_v20 = vmul.f32 %v71_v18, %v37_v17 }
 0x136   :  { %v85_v19 = vpop.eup %84 }
 0x137   :  { %v38_v21 = vmul.f32 %v85_v19, %v24_v8  ;;  %v55_v24 = vadd.f32 %v72_v22, %v46_v20 }
 0x139   :  { %v47_v23 = vmul.f32 %v71_v18, %v38_v21 }
 0x13b   :  { %v56_v25 = vadd.f32 %v72_v22, %v47_v23 }
 0x13d   :  { %v80_v26 = vpack.c.bf16 %v56_v25, %v55_v24 }
 0x13f   :  { %81 = vst [vmem:[%s124_s3] sm:$0xff] %v80_v26  }

// kernel: rc_model_forward.15
= control target key start
LH: loop header
LB: loop body
LE: loop exit
PB: predicated region body
PF: predicated region fallthrough
CT: control target
= control target key end

     0   :  { %v274_v0 = vmov 0.0   ;;  %vm275_vm0 = vmmov 0   ;;  %s353_s1 = inlined_call_operand.vmem [shape: bf16[128,128], index: 1, kind: input, shape index: {}]   ;;  %s354_s0 = inlined_call_operand.vmem [shape: bf16[16,128], index: 0, kind: input, shape index: {}]   ;;  %s355_s3 = inlined_call_operand.vmem [shape: bf16[16,128], index: 3, kind: input, shape index: {}]   ;;  %s356_s2 = inlined_call_operand.vmem [shape: f32[1,128], index: 2, kind: input, shape index: {}]   ;;  %s357_s4 = inlined_call_operand.vmem [shape: f32[1,128], index: 4, kind: input, shape index: {}]   ;;  %s358_s5 = inlined_call_operand.vmem [shape: f32[1,128], index: 5, kind: input, shape index: {}]   ;;  %s359_s6 = inlined_call_operand.vmem [shape: bf16[16,128], index: 6, kind: output, shape index: {}]  }
   0x1   :  { %239 = vmatprep.subr.bf16.mxu0 %v274_v0  ;;  %v261_v1 = vld [vmem:[%s353_s1] sm:$0xff]   ;;  %255 = vmatprep.mubr.msk.bf16.mxu0 %vm275_vm0, %v274_v0  ;;  %v262_v2 = vld [vmem:[%s353_s1 + $0x8] sm:$0xff]   ;;  %v263_v3 = vld [vmem:[%s353_s1 + $0x10] sm:$0xff]  }
   0x2   :  { %240 = vmatpush3.bf16.msra.mxu0 %v261_v1  ;;  %v264_v4 = vld [vmem:[%s353_s1 + $0x18] sm:$0xff]   ;;  %v265_v5 = vld [vmem:[%s353_s1 + $0x20] sm:$0xff]   ;;  %v266_v6 = vld [vmem:[%s353_s1 + $0x28] sm:$0xff]  }
   0x3   :  { %241 = vmatprep.subr.bf16.mxu0 %v274_v0  ;;  %v267_v7 = vld [vmem:[%s353_s1 + $0x30] sm:$0xff]   ;;  %v268_v8 = vld [vmem:[%s353_s1 + $0x38] sm:$0xff]   ;;  %v269_v9 = vld [vmem:[%s354_s0] sm:$0xff]  }
   0x4   :  { %v222_v10 = vld [vmem:[%s355_s3] sm:$0xff]  }
   0x5   :  { %v205_v11 = vld [vmem:[%s356_s2] ss:$0 sm:$0xff]  ;;  %v223_v12 = vunpack.c.l.bf16 %v222_v10  ;;  %v224_v20 = vunpack.c.h.bf16 %v222_v10 }
   0x6   :  { %242 = vmatpush3.bf16.msra.mxu0 %v262_v2  ;;  %v215_v38 = vld [vmem:[%s357_s4] ss:$0 sm:$0xff] }
   0x7   :  { %243 = vmatprep.subr.bf16.mxu0 %v274_v0  ;;  %v216_v42 = vld [vmem:[%s358_s5] ss:$0 sm:$0xff] }
   0xa   :  { %244 = vmatpush3.bf16.msra.mxu0 %v263_v3 }
   0xb   :  { %245 = vmatprep.subr.bf16.mxu0 %v274_v0 }
   0xe   :  { %246 = vmatpush3.bf16.msra.mxu0 %v264_v4 }
   0xf   :  { %247 = vmatprep.subr.bf16.mxu0 %v274_v0 }
  0x12   :  { %248 = vmatpush3.bf16.msra.mxu0 %v265_v5 }
  0x13   :  { %249 = vmatprep.subr.bf16.mxu0 %v274_v0 }
  0x16   :  { %250 = vmatpush3.bf16.msra.mxu0 %v266_v6 }
  0x17   :  { %251 = vmatprep.subr.bf16.mxu0 %v274_v0 }
  0x1a   :  { %252 = vmatpush3.bf16.msra.mxu0 %v267_v7 }
  0x1b   :  { %253 = vmatprep.subr.bf16.mxu0 %v274_v0 }
  0x1e   :  { %254 = vmatpush3.bf16.msra.mxu0 %v268_v8 }
  0x21   :  { %256 = vmatmul.mubr.bf16.vlgmr.msra.gmra.mrb[0].mxu0 %v269_v9 }
  0xf4   :  { %v137_v13 = vpop.f32.mrb[0].mxu0 }
  0xf5   :  { %v138_v14 = vadd.f32 %v205_v11, %v137_v13  ;;  %v257_v15 = vpop.f32.mrb[1].mxu0 }
  0xf6   :  { %v140_v16 = vpop.f32.mrb[2].mxu0 }
  0xf7   :  { %v141_v17 = vadd.f32 %v205_v11, %v140_v16  ;;  %v258_v18 = vpop.f32.mrb[3].mxu0  ;;  %v148_v19 = vadd.f32 %v223_v12, %v138_v14 }
  0xf9   :  { %150 = vadd.xlane.f32.xlu0 %v148_v19  ;;  %v149_v21 = vadd.f32 %v224_v20, %v141_v17 }
  0xfd   :  { %152 = vadd.xlane.f32.xlu0 %v149_v21 }
 0x186   :  { %v151_v22 = vpop.xlane.xlu0 %150 }
 0x187   :  { %v155_v23 = vmul.f32 0.0078125, %v151_v22 }
 0x189   :  { %v157_v24 = vsub.f32 %v148_v19, %v155_v23 }
 0x18a   :  { %v153_v25 = vpop.xlane.xlu0 %152 }
 0x18b   :  { %v156_v26 = vmul.f32 0.0078125, %v153_v25  ;;  %v159_v27 = vmul.f32 %v157_v24, %v157_v24 }
 0x18d   :  { %v158_v28 = vsub.f32 %v149_v21, %v156_v26  ;;  %161 = vadd.xlane.f32.xlu1 %v159_v27 }
 0x18f   :  { %v160_v29 = vmul.f32 %v158_v28, %v158_v28 }
 0x191   :  { %163 = vadd.xlane.f32.xlu1 %v160_v29 }
 0x21a   :  { %v162_v30 = vpop.xlane.xlu1 %161 }
 0x21b   :  { %v165_v31 = vmul.f32 0.0078125, %v162_v30 }
 0x21d   :  { %v167_v32 = vadd.f32 1e-12, %v165_v31 }
 0x21e   :  { %v164_v33 = vpop.xlane.xlu1 %163 }
 0x21f   :  { %270 = vrsqrt.f32 %v167_v32  ;;  %v166_v34 = vmul.f32 0.0078125, %v164_v33 }
 0x221   :  { %v168_v35 = vadd.f32 1e-12, %v166_v34 }
 0x223   :  { %272 = vrsqrt.f32 %v168_v35 }
 0x229   :  { %v271_v36 = vpop.eup %270 }
 0x22a   :  { %v171_v37 = vmul.f32 %v271_v36, %v157_v24 }
 0x22c   :  { %v180_v40 = vmul.f32 %v215_v38, %v171_v37 }
 0x22d   :  { %v273_v39 = vpop.eup %272 }
 0x22e   :  { %v172_v41 = vmul.f32 %v273_v39, %v158_v28  ;;  %v189_v44 = vadd.f32 %v216_v42, %v180_v40 }
 0x230   :  { %v181_v43 = vmul.f32 %v215_v38, %v172_v41 }
 0x232   :  { %v190_v45 = vadd.f32 %v216_v42, %v181_v43 }
 0x234   :  { %v228_v46 = vpack.c.bf16 %v190_v45, %v189_v44 }
 0x236   :  { %229 = vst [vmem:[%s359_s6] sm:$0xff] %v228_v46  }

// kernel: rc_model_forward.13
= control target key start
LH: loop header
LB: loop body
LE: loop exit
PB: predicated region body
PF: predicated region fallthrough
CT: control target
= control target key end

     0   :  { %v410_v0 = vmov 0.0   ;;  %vm411_vm0 = vmmov 0   ;;  %v412_v3 = vmov 0   ;;  %v51_v27 = vlaneseq  ;;  %s523_s1 = inlined_call_operand.vmem [shape: bf16[128,384], index: 1, kind: input, shape index: {}]   ;;  %s524_s0 = inlined_call_operand.vmem [shape: bf16[16,128], index: 0, kind: input, shape index: {}]   ;;  %s525_s2 = inlined_call_operand.vmem [shape: f32[1,384], index: 2, kind: input, shape index: {}]   ;;  %s526_s3 = inlined_call_operand.vmem [shape: bf16[16,384], index: 3, kind: output, shape index: {}]  }
   0x1   :  { %354 = vmatprep.subr.bf16.mxu1 %v410_v0  ;;  %v377_v1 = vld [vmem:[%s523_s1 + $0x4] ss:$12 sps:$4 sm:$0xff]   ;;  %370 = vmatprep.mubr.msk.bf16.mxu1 %vm411_vm0, %v410_v0  ;;  %v379_v2 = vld [vmem:[%s523_s1 + $0x8] ss:$12 sps:$4 sm:$0xff]   ;;  %v380_v4 = vld [vmem:[%s523_s1] ss:$12 sps:$4 sm:$0xff]  }
   0x2   :  { %232 = vmatprep.mubr.bf16.mxu0 %v412_v3  ;;  %200 = vmatprep.subr.bf16.mxu0 %v377_v1  ;;  %v381_v5 = vld [vmem:[%s523_s1 + $0x1c] ss:$12 sps:$4 sm:$0xff]   ;;  %v383_v6 = vld [vmem:[%s523_s1 + $0x20] ss:$12 sps:$4 sm:$0xff]   ;;  %v384_v7 = vld [vmem:[%s523_s1 + $0x18] ss:$12 sps:$4 sm:$0xff]  }
   0x3   :  { %355 = vmatpush3.bf16.msra.mxu1 %v379_v2  ;;  %201 = vmatpush1.bf16.msra.mxu0 %v380_v4  ;;  %v385_v8 = vld [vmem:[%s523_s1 + $0x34] ss:$12 sps:$4 sm:$0xff]   ;;  %v387_v9 = vld [vmem:[%s523_s1 + $0x38] ss:$12 sps:$4 sm:$0xff]   ;;  %v388_v10 = vld [vmem:[%s523_s1 + $0x30] ss:$12 sps:$4 sm:$0xff]  }
   0x4   :  { %356 = vmatprep.subr.bf16.mxu1 %v410_v0  ;;  %202 = vmatprep.subr.bf16.mxu0 %v381_v5  ;;  %v389_v11 = vld [vmem:[%s523_s1 + $0x4c] ss:$12 sps:$4 sm:$0xff]   ;;  %v391_v12 = vld [vmem:[%s523_s1 + $0x50] ss:$12 sps:$4 sm:$0xff]   ;;  %v392_v13 = vld [vmem:[%s523_s1 + $0x48] ss:$12 sps:$4 sm:$0xff]  }
   0x5   :  { %v393_v14 = vld [vmem:[%s523_s1 + $0x64] ss:$12 sps:$4 sm:$0xff]   ;;  %v395_v15 = vld [vmem:[%s523_s1 + $0x68] ss:$12 sps:$4 sm:$0xff]   ;;  %v396_v16 = vld [vmem:[%s523_s1 + $0x60] ss:$12 sps:$4 sm:$0xff]  }
   0x6   :  { %v397_v17 = vld [vmem:[%s523_s1 + $0x7c] ss:$12 sps:$4 sm:$0xff]   ;;  %v399_v18 = vld [vmem:[%s523_s1 + $0x80] ss:$12 sps:$4 sm:$0xff]   ;;  %v400_v19 = vld [vmem:[%s523_s1 + $0x78] ss:$12 sps:$4 sm:$0xff]  }
   0x7   :  { %357 = vmatpush3.bf16.msra.mxu1 %v383_v6  ;;  %203 = vmatpush1.bf16.msra.mxu0 %v384_v7  ;;  %v401_v20 = vld [vmem:[%s523_s1 + $0x94] ss:$12 sps:$4 sm:$0xff]   ;;  %v403_v21 = vld [vmem:[%s523_s1 + $0x98] ss:$12 sps:$4 sm:$0xff]   ;;  %v404_v22 = vld [vmem:[%s523_s1 + $0x90] ss:$12 sps:$4 sm:$0xff]  }
   0x8   :  { %358 = vmatprep.subr.bf16.mxu1 %v410_v0  ;;  %204 = vmatprep.subr.bf16.mxu0 %v385_v8  ;;  %v405_v23 = vld [vmem:[%s523_s1 + $0xac] ss:$12 sps:$4 sm:$0xff]   ;;  %v407_v24 = vld [vmem:[%s523_s1 + $0xb0] ss:$12 sps:$4 sm:$0xff]   ;;  %v408_v25 = vld [vmem:[%s523_s1 + $0xa8] ss:$12 sps:$4 sm:$0xff]  }
   0x9   :  { %v409_v26 = vld [vmem:[%s524_s0] sm:$0xff]   ;;  %v52_v28 = vshrl.u32 %v51_v27, 7 }
   0xa   :  { %v49_v30 = vld [vmem:[%s525_s2] sm:$0x7] }
   0xb   :  { %359 = vmatpush3.bf16.msra.mxu1 %v387_v9  ;;  %205 = vmatpush1.bf16.msra.mxu0 %v388_v10  ;;  %v61_v29 = vsub.s32 2, %v52_v28  ;;  %v53_v31 = vsub.s32 0, %v52_v28  ;;  %v57_v32 = vsub.s32 1, %v52_v28 }
   0xc   :  { %360 = vmatprep.subr.bf16.mxu1 %v410_v0  ;;  %206 = vmatprep.subr.bf16.mxu0 %v389_v11 }
   0xd   :  { %v62_v33 = vrot.slane %v49_v30, %v61_v29  ;;  %v54_v34 = vrot.slane %v49_v30, %v53_v31  ;;  %v58_v35 = vrot.slane %v49_v30, %v57_v32 }
   0xf   :  { %361 = vmatpush3.bf16.msra.mxu1 %v391_v12  ;;  %207 = vmatpush1.bf16.msra.mxu0 %v392_v13 }
  0x10   :  { %362 = vmatprep.subr.bf16.mxu1 %v410_v0  ;;  %208 = vmatprep.subr.bf16.mxu0 %v393_v14 }
  0x13   :  { %363 = vmatpush3.bf16.msra.mxu1 %v395_v15  ;;  %209 = vmatpush1.bf16.msra.mxu0 %v396_v16 }
  0x14   :  { %364 = vmatprep.subr.bf16.mxu1 %v410_v0  ;;  %210 = vmatprep.subr.bf16.mxu0 %v397_v17 }
  0x17   :  { %365 = vmatpush3.bf16.msra.mxu1 %v399_v18  ;;  %211 = vmatpush1.bf16.msra.mxu0 %v400_v19 }
  0x18   :  { %366 = vmatprep.subr.bf16.mxu1 %v410_v0  ;;  %212 = vmatprep.subr.bf16.mxu0 %v401_v20 }
  0x1b   :  { %367 = vmatpush3.bf16.msra.mxu1 %v403_v21  ;;  %213 = vmatpush1.bf16.msra.mxu0 %v404_v22 }
  0x1c   :  { %368 = vmatprep.subr.bf16.mxu1 %v410_v0  ;;  %214 = vmatprep.subr.bf16.mxu0 %v405_v23 }
  0x1f   :  { %369 = vmatpush3.bf16.msra.mxu1 %v407_v24  ;;  %215 = vmatpush1.bf16.msra.mxu0 %v408_v25 }
  0x22   :  { %371 = vmatmul.mubr.bf16.vlgmr.msra.gmra.mrb[0].mxu1 %v409_v26  ;;  %233 = vmatmul.mubr.bf16.vlgmr.msra.gmra.mrb[0].mxu0 %v409_v26 }
  0xf5   :  { %v277_v36 = vpop.f32.mrb[0].mxu1  ;;  %v234_v38 = vpop.f32.mrb[0].mxu0 }
  0xf6   :  { %v278_v37 = vadd.f32 %v277_v36, %v62_v33  ;;  %v372_v39 = vpop.f32.mrb[1].mxu1  ;;  %v235_v40 = vadd.f32 %v234_v38, %v54_v34  ;;  %v236_v41 = vpop.f32.mrb[1].mxu0 }
  0xf7   :  { %v280_v42 = vpop.f32.mrb[2].mxu1  ;;  %v237_v44 = vadd.f32 %v236_v41, %v58_v35  ;;  %v238_v46 = vpop.f32.mrb[2].mxu0 }
  0xf8   :  { %v342_v43 = vpack.c.bf16 %v278_v37, %v278_v37  ;;  %v281_v45 = vadd.f32 %v280_v42, %v62_v33  ;;  %v373_v47 = vpop.f32.mrb[3].mxu1  ;;  %v239_v48 = vadd.f32 %v238_v46, %v54_v34  ;;  %v240_v49 = vpop.f32.mrb[3].mxu0 }
  0xf9   :  { %v341_v50 = vpack.c.bf16 %v237_v44, %v235_v40  ;;  %v241_v52 = vadd.f32 %v240_v49, %v58_v35 }
  0xfa   :  { %305 = vst [vmem:[%s526_s3 + $0x8] sm:$0xf] %v342_v43  ;;  %v344_v51 = vpack.c.bf16 %v281_v45, %v281_v45 }
  0xfb   :  { %304 = vst [vmem:[%s526_s3] sm:$0xff] %v341_v50  ;;  %v343_v53 = vpack.c.bf16 %v241_v52, %v239_v48 }
  0xfc   :  { %307 = vst [vmem:[%s526_s3 + $0x14] sm:$0xf] %v344_v51 }
  0xfd   :  { %306 = vst [vmem:[%s526_s3 + $0xc] sm:$0xff] %v343_v53 }

// kernel: rc_model_forward.14
= control target key start
LH: loop header
LB: loop body
LE: loop exit
PB: predicated region body
PF: predicated region fallthrough
CT: control target
= control target key end

     0   :  { %s959_s12 = smov 0   ;;  %s961_s13 = smov 0   ;;  %s1046_s0 = inlined_call_operand.vmem [shape: bf16[2,8,384], index: 0, kind: input, shape index: {}, may-alias: {0,1,2}]   ;;  %s1047_s1 = inlined_call_operand.vmem [shape: bf16[2,8,384], index: 1, kind: input, shape index: {}, may-alias: {0,1,2}]   ;;  %s1048_s2 = inlined_call_operand.vmem [shape: bf16[2,8,384], index: 2, kind: input, shape index: {}, may-alias: {0,1,2}]   ;;  %s1049_s3 = inlined_call_operand.vmem [shape: bf16[2,8,128], index: 3, kind: output, shape index: {}]  }
   0x1   :  { %s963_s14 = smov 0  }
   0x2 LB: > { %s39_s15 = sadd.s32 1, %s928_s13  ;;  %p812_p0 = scmp.ge.s32.totalorder %s932_s14, 1  ;;  %s932_s14 = sphi %s963_s14, %s13_s14   ;;  %s928_s13 = sphi %s961_s13, %s1051_s13   ;;  %s924_s12 = sphi %s959_s12, %s1050_s12  }
   0x3   : > { %p41_p1 = scmp.ge.s32.totalorder %s39_s15, 2  ;;  %p228_p2 = scmp.lt.s32.totalorder %s932_s14, 3 }
   0x5   : > { %s1053_s15 = smov (%p41_p1, %s39_s15), 0  ;;  %p229_p3 = pnand %p812_p0, %p228_p2 }
   0x6   : > { %p290_p4 = scmp.lt.s32.totalorder (!%p229_p3), %s924_s12, 1  ;;  %v934_v0 = vmov (!%p229_p3), 0.0   ;;  %vm935_vm0 = vmmov (!%p229_p3), 0   ;;  %vm356_vm1 = vcmask (!%p229_p3), 523264   ;;  %vm346_vm2 = vcmask (!%p229_p3), 7168   ;;  %s938_s28 = smov (!%p229_p3), 64  }
   0x7   : > { %232 = sbr.rel (%p229_p3) target bundleno = 1390 (0x56e), region = 32  ;;  %838 = vmatprep.subr.bf16.mxu0 (!%p229_p3), %v934_v0  ;;  %351 = vst [vmem:[#allocation4] sm:$0xff] (!%p229_p3), %v934_v0  ;;  %840 = vmatprep.mubr.msk.bf16.mxu0 (!%p229_p3), %vm935_vm0, %v934_v0  ;;  %v936_v5 = vmov (!%p229_p3), -1e+30   ;;  %349 = vst.msk [vmem:[#allocation3] sm:$0xff] (!%p229_p3), %vm346_vm2, %v934_v0  ;;  %vm404_vm3 = vcmask (!%p229_p3), 64512  }
   0x8   : > { %844 = vmatprep.subr.bf16.mxu1 (!%p229_p3), %v934_v0  ;;  %846 = vmatprep.mubr.msk.bf16.mxu1 (!%p229_p3), %vm935_vm0, %v934_v0  ;;  %347 = vst.msk [vmem:[#allocation2] sm:$0xff] (!%p229_p3), %vm346_vm2, %v936_v5  ;;  %348 = vst.msk [vmem:[#allocation2 + $0x8] sm:$0xff] (!%p229_p3), %vm346_vm2, %v936_v5  ;;  %v937_v11 = vmov (!%p229_p3), 0   ;;  %vm439_vm4 = vcmask (!%p229_p3), 1043456   ;;  %vm635_vm5 = vcmask (!%p229_p3), 1048064  }
   0x9   : > { %350 = vst.msk [vmem:[#allocation3 + $0x8] sm:$0xff] (!%p229_p3), %vm346_vm2, %v934_v0  ;;  %894 = vset.pattern.permute.xlu0 (!%p229_p3), %v937_v11  ;;  %895 = vset.pattern.permute.xlu1 (!%p229_p3), %v937_v11 }
   0xe   : > { %s1055_s12 = smov (!%p290_p4, %s924_s12), 1  ;;  %v420_v36 = vld [vmem:[#allocation3] sm:$0xff] }
   0xf   : > { %s987_s16 = smul.u32 12, %s1055_s12  ;;  %v403_v16 = vld [vmem:[#allocation2] sm:$0xff]  ;;  %v547_v54 = vld [vmem:[#allocation2 + $0x8] sm:$0xff]  ;;  %s816_s29 = sshll.u32 %s1055_s12, 2 }
  0x10   : > { %s339_s5 = scalar_lea.vmem %s1049_s3, %s816_s29 }
  0x11   : > { %s827_s17 = sadd.s32 4, %s987_s16  ;;  %s301_s23 = scalar_lea.vmem %s1046_s0, %s987_s16 }
  0x12   : > { %s314_s20 = scalar_lea.vmem %s1047_s1, %s827_s17  ;;  %v352_v3 = vld [vmem:[%s301_s23] sm:$0xf]  ;;  %s829_s24 = sadd.s32 8, %s987_s16 }
  0x13   : > { %v354_v1 = vld [vmem:[%s314_s20] sm:$0xf]  ;;  %v353_v4 = vmul.bf16 1040203264, %v352_v3  ;;  %s328_s27 = scalar_lea.vmem %s1048_s2, %s829_s24 }
  0x14   : > { %v361_v2 = vsel %vm356_vm1, %v354_v1, 0  ;;  %v896_v12 = vld [vmem:[%s314_s20] ss:$0 sps:$4 sm:$0xff]  }
  0x15   : > { %839 = vmatpush3.bf16.xpose.msra.mxu0 %v361_v2  ;;  %v486_v13 = vld [vmem:[%s301_s23] sm:$0xf]  ;;  %498 = vrot.lane.b32.xlu1 %v896_v12, %s938_s28  ;;  %v564_v2 = vld [vmem:[#allocation3 + $0x8] sm:$0xff] }
  0x16   : > { %856 = vmatprep.subr.bf16.mxu0 %v934_v0  ;;  %v487_v14 = vmul.bf16 1040203264, %v486_v13  ;;  %v897_v20 = vld [vmem:[%s328_s27] ss:$0 sps:$4 sm:$0xff]  }
  0x17   : > { %v355_v21 = vld [vmem:[%s328_s27] sm:$0xf] }
  0x18   : > { %v819_v15 = vcombine.low %v487_v14, %v487_v14  ;;  %v441_v22 = vsel %vm439_vm4, %v355_v21, 0 }
  0x19   : > { %845 = vmatpush3.bf16.msra.mxu1 %v441_v22 }
  0x1a   : > { %493 = vrot.lane.b32.xlu1 %v819_v15, %s938_s28  ;;  %850 = vmatprep.subr.bf16.mxu1 %v934_v0 }
  0x1c   : > { %841 = vmatmul.mubr.msk.bf16.vlgmr.msra.gmra.mrb[0].mxu0 %vm356_vm1, %v353_v4 }
  0x1d   : > { %858 = vmatprep.mubr.msk.bf16.mxu0 %vm935_vm0, %v934_v0 }
  0x87   : > { %v499_v28 = vpop.permute.xlu1 %498 }
  0x88   : > { %v504_v30 = vsel %vm356_vm1, %v499_v28, 0 }
  0x8c   : > { %v494_v33 = vpop.permute.xlu1 %493 }
  0xef   : > { %v397_v6 = vpop.f32.mrb[0].mxu0 }
  0xf0   : > { %v842_v7 = vpop.f32.mrb[1].mxu0  ;;  %v405_v8 = vsel %vm404_vm3, %v397_v6, -inf }
  0xf1   : > { %406 = vmax.xlane.f32.xlu0 %v405_v8  ;;  %v400_v9 = vpop.f32.mrb[2].mxu0 }
  0xf2   : > { %v843_v10 = vpop.f32.mrb[3].mxu0 }
 0x17e   : > { %v407_v17 = vpop.xlane.xlu0 %406 }
 0x17f   : > { %v408_v18 = vmax.f32 %v403_v16, %v407_v17 }
 0x181   : > { %v409_v19 = vsub.f32 %v403_v16, %v408_v18  ;;  %485 = vst.msk [vmem:[#allocation2] sm:$0xff] %vm346_vm2, %v408_v18  ;;  %414 = vperm.xlu0 %894, %v408_v18  }
 0x183   : > { %v410_v34 = vmul.f32 1.442695, %v409_v19 }
 0x185   : > { %582 = vrot.lane.b32.xlu0 %v897_v20, %s938_s28 }
 0x200   : > { %v415_v23 = vpop.permute.xlu0 %414 }
 0x201   : > { %v417_v24 = vsub.f32 %v397_v6, %v415_v23 }
 0x203   : > { %v418_v25 = vmul.f32 1.442695, %v417_v24 }
 0x204   : > { %v583_v26 = vpop.permute.xlu0 %582 }
 0x205   : > { %898 = vpow2.f32 %v418_v25  ;;  %v588_v27 = vsel %vm439_vm4, %v583_v26, 0 }
 0x206   : > { %857 = vmatpush3.bf16.msra.mxu0 %v588_v27  ;;  %900 = vpow2.f32 %v410_v34 }
 0x20f   : > { %v899_v29 = vpop.eup %898 }
 0x210   : > { %v422_v31 = vsel %vm404_vm3, %v899_v29, 0.0  ;;  %v435_v32 = vpack.c.bf16 %v899_v29, %v899_v29  ;;  %v901_v35 = vpop.eup %900 }
 0x211   : > { %423 = vadd.xlane.f32.xlu0 %v422_v31  ;;  %v421_v37 = vmul.f32 %v901_v35, %v420_v36 }
 0x212   : > { %847 = vmatmul.mubr.msk.bf16.vlgmr.msra.gmra.mrb[0].mxu1 %vm404_vm3, %v435_v32 }
 0x213   : > { %851 = vmatpush3.bf16.xpose.msra.mxu1 %v504_v30  ;;  %852 = vmatprep.mubr.msk.bf16.mxu1 %vm935_vm0, %v934_v0 }
 0x21a   : > { %853 = vmatmul.mubr.msk.bf16.vlgmr.msra.gmra.mrb[4].mxu1 %vm356_vm1, %v494_v33 }
 0x227   : > { %431 = vperm.xlu0 %894, %v901_v35  }
 0x29e   : > { %v424_v38 = vpop.xlane.xlu0 %423 }
 0x29f   : > { %v425_v39 = vadd.f32 %v424_v38, %v421_v37 }
 0x2a1   : > { %427 = vst.msk [vmem:[#allocation3] sm:$0xff] %vm346_vm2, %v425_v39 }
 0x2a6   : > { %v432_v42 = vpop.permute.xlu0 %431 }
 0x2a7   : > { %v434_v43 = vmul.f32 0.0, %v432_v42 }
 0x2a8   : > { %v642_v40 = vld [vmem:[#allocation3] sm:$0xff] }
 0x2a9   : > { %902 = vrcp.f32 %v642_v40 }
 0x2b3   : > { %v903_v41 = vpop.eup %902 }
 0x2b4   : > { %646 = vperm.xlu0 %894, %v903_v41  }
 0x2e5   : > { %v477_v44 = vpop.f32.mrb[0].mxu1 }
 0x2e6   : > { %v483_v45 = vadd.f32 %v477_v44, %v434_v43  ;;  %v848_v46 = vpop.f32.mrb[1].mxu1 }
 0x2e7   : > { %v480_v47 = vpop.f32.mrb[2].mxu1 }
 0x2e8   : > { %484 = vst.msk [vmem:[#allocation4] sm:$0xff] %vm356_vm1, %v483_v45  ;;  %v849_v48 = vpop.f32.mrb[3].mxu1 }
 0x2ed   : > { %v540_v49 = vpop.f32.mrb[4].mxu1 }
 0x2ee   : > { %v854_v50 = vpop.f32.mrb[5].mxu1  ;;  %v548_v51 = vsel %vm404_vm3, %v540_v49, -inf }
 0x2ef   : > { %549 = vmax.xlane.f32.xlu1 %v548_v51  ;;  %v543_v52 = vpop.f32.mrb[6].mxu1  ;;  %v571_v14 = vld [vmem:[#allocation4] sm:$0xff] }
 0x2f0   : > { %v855_v53 = vpop.f32.mrb[7].mxu1 }
 0x333   : > { %v647_v12 = vpop.permute.xlu0 %646 }
 0x37c   : > { %v550_v55 = vpop.xlane.xlu1 %549 }
 0x37d   : > { %v551_v56 = vmax.f32 %v547_v54, %v550_v55 }
 0x37f   : > { %v552_v57 = vsub.f32 %v547_v54, %v551_v56  ;;  %637 = vst.msk [vmem:[#allocation2 + $0x8] sm:$0xff] %vm346_vm2, %v551_v56  ;;  %557 = vperm.xlu1 %895, %v551_v56  }
 0x381   : > { %v553_v0 = vmul.f32 1.442695, %v552_v57 }
 0x3fe   : > { %v558_v58 = vpop.permute.xlu1 %557 }
 0x3ff   : > { %v560_v59 = vsub.f32 %v540_v49, %v558_v58 }
 0x401   : > { %v561_v60 = vmul.f32 1.442695, %v560_v59 }
 0x403   : > { %904 = vpow2.f32 %v561_v60 }
 0x404   : > { %906 = vpow2.f32 %v553_v0 }
 0x40d   : > { %v905_v61 = vpop.eup %904 }
 0x40e   : > { %v566_v62 = vsel %vm404_vm3, %v905_v61, 0.0  ;;  %v578_v63 = vpack.c.bf16 %v905_v61, %v905_v61  ;;  %v907_v1 = vpop.eup %906 }
 0x40f   : > { %567 = vadd.xlane.f32.xlu1 %v566_v62  ;;  %v565_v3 = vmul.f32 %v907_v1, %v564_v2 }
 0x410   : > { %859 = vmatmul.mubr.msk.bf16.vlgmr.msra.gmra.mrb[4].mxu0 %vm404_vm3, %v578_v63 }
 0x420   : > { %574 = vperm.xlu1 %895, %v907_v1  }
 0x49c   : > { %v568_v4 = vpop.xlane.xlu1 %567 }
 0x49d   : > { %v569_v5 = vadd.f32 %v568_v4, %v565_v3 }
 0x49f   : > { %570 = vst.msk [vmem:[#allocation3 + $0x8] sm:$0xff] %vm346_vm2, %v569_v5 }
 0x4a0   : > { %v575_v13 = vpop.permute.xlu1 %574 }
 0x4a1   : > { %v577_v15 = vmul.f32 %v575_v13, %v571_v14 }
 0x4a6   : > { %v650_v6 = vld [vmem:[#allocation3 + $0x8] sm:$0xff] }
 0x4a7   : > { %908 = vrcp.f32 %v650_v6 }
 0x4b1   : > { %v909_v11 = vpop.eup %908 }
 0x4e3   : > { %v624_v7 = vpop.f32.mrb[4].mxu0 }
 0x4e4   : > { %631 = vrot.lane.b32.xlu0 %v624_v7, %s938_s28  ;;  %v860_v8 = vpop.f32.mrb[5].mxu0 }
 0x4e5   : > { %v627_v9 = vpop.f32.mrb[6].mxu0 }
 0x4e6   : > { %v861_v10 = vpop.f32.mrb[7].mxu0 }
 0x4e8   : > { %654 = vperm.xlu0 %894, %v909_v11  }
 0x556   : > { %v632_v16 = vpop.permute.xlu0 %631 }
 0x557   : > { %v634_v17 = vadd.f32 %v632_v16, %v577_v15 }
 0x559   : > { %636 = vst.msk [vmem:[#allocation4] sm:$0xff] %vm635_vm5, %v634_v17 }
 0x560   : > { %v641_v18 = vld [vmem:[#allocation4] sm:$0xff] }
 0x561   : > { %v649_v20 = vmul.f32 %v647_v12, %v641_v18 }
 0x567   : > { %v655_v19 = vpop.permute.xlu0 %654 }
 0x568   : > { %v657_v21 = vmul.f32 %v655_v19, %v641_v18 }
 0x56a   : > { %v658_v22 = vsel %vm356_vm1, %v649_v20, %v657_v21 }
 0x56b   : > { %v659_v23 = vpack.c.bf16 %v658_v22, %v658_v22 }
 0x56d   : > { %660 = vst [vmem:[%s339_s5] sm:$0xf] %v659_v23 }
 0x56e PF: > { %s13_s14 = sadd.s32 1, %s932_s14   ;;  %s1050_s12 = smov %s928_s13 }
 0x56f   : > { %p10_p5 = scmp.ge.s32.totalorder %s13_s14, 4   ;;  %s1051_s13 = smov %s1053_s15 }
 0x571   :  { %12 = sbr.rel (!%p10_p5) target bundleno = 2 (0x2), region = 78 }

// kernel: rc_model_forward.16
= control target key start
LH: loop header
LB: loop body
LE: loop exit
PB: predicated region body
PF: predicated region fallthrough
CT: control target
= control target key end

     0   :  { %v283_v1 = vmov 0   ;;  %v35_v18 = vlaneseq  ;;  %s364_s1 = inlined_call_operand.vmem [shape: bf16[128,256], index: 1, kind: input, shape index: {}]   ;;  %s365_s0 = inlined_call_operand.vmem [shape: bf16[16,128], index: 0, kind: input, shape index: {}]   ;;  %s366_s2 = inlined_call_operand.vmem [shape: f32[1,256], index: 2, kind: input, shape index: {}]   ;;  %s367_s3 = inlined_call_operand.vmem [shape: bf16[16,256], index: 3, kind: output, shape index: {}]  }
   0x1   :  { %v250_v0 = vld [vmem:[%s364_s1 + $0x4] ss:$8 sps:$4 sm:$0xff]   ;;  %163 = vmatprep.mubr.bf16.mxu0 %v283_v1  ;;  %v252_v2 = vld [vmem:[%s364_s1] ss:$8 sps:$4 sm:$0xff]   ;;  %v253_v3 = vld [vmem:[%s364_s1 + $0x14] ss:$8 sps:$4 sm:$0xff]  }
   0x2   :  { %131 = vmatprep.subr.bf16.mxu0 %v250_v0  ;;  %v255_v4 = vld [vmem:[%s364_s1 + $0x10] ss:$8 sps:$4 sm:$0xff]   ;;  %v256_v5 = vld [vmem:[%s364_s1 + $0x24] ss:$8 sps:$4 sm:$0xff]   ;;  %v258_v6 = vld [vmem:[%s364_s1 + $0x20] ss:$8 sps:$4 sm:$0xff]  }
   0x3   :  { %132 = vmatpush1.bf16.msra.mxu0 %v252_v2  ;;  %v259_v7 = vld [vmem:[%s364_s1 + $0x34] ss:$8 sps:$4 sm:$0xff]   ;;  %v261_v8 = vld [vmem:[%s364_s1 + $0x30] ss:$8 sps:$4 sm:$0xff]   ;;  %v262_v9 = vld [vmem:[%s364_s1 + $0x44] ss:$8 sps:$4 sm:$0xff]  }
   0x4   :  { %133 = vmatprep.subr.bf16.mxu0 %v253_v3  ;;  %v264_v10 = vld [vmem:[%s364_s1 + $0x40] ss:$8 sps:$4 sm:$0xff]   ;;  %v265_v11 = vld [vmem:[%s364_s1 + $0x54] ss:$8 sps:$4 sm:$0xff]   ;;  %v267_v12 = vld [vmem:[%s364_s1 + $0x50] ss:$8 sps:$4 sm:$0xff]  }
   0x5   :  { %v268_v13 = vld [vmem:[%s364_s1 + $0x64] ss:$8 sps:$4 sm:$0xff]   ;;  %v270_v14 = vld [vmem:[%s364_s1 + $0x60] ss:$8 sps:$4 sm:$0xff]   ;;  %v271_v15 = vld [vmem:[%s364_s1 + $0x74] ss:$8 sps:$4 sm:$0xff]  }
   0x6   :  { %v273_v16 = vld [vmem:[%s364_s1 + $0x70] ss:$8 sps:$4 sm:$0xff]   ;;  %v274_v17 = vld [vmem:[%s365_s0] sm:$0xff]   ;;  %v36_v19 = vshrl.u32 %v35_v18, 7 }
   0x7   :  { %134 = vmatpush1.bf16.msra.mxu0 %v255_v4  ;;  %v33_v21 = vld [vmem:[%s366_s2] sm:$0x3] }
   0x8   :  { %135 = vmatprep.subr.bf16.mxu0 %v256_v5  ;;  %v37_v20 = vsub.s32 0, %v36_v19  ;;  %v41_v22 = vsub.s32 1, %v36_v19 }
   0xa   :  { %v38_v23 = vrot.slane %v33_v21, %v37_v20  ;;  %v42_v24 = vrot.slane %v33_v21, %v41_v22 }
   0xb   :  { %136 = vmatpush1.bf16.msra.mxu0 %v258_v6 }
   0xc   :  { %137 = vmatprep.subr.bf16.mxu0 %v259_v7 }
   0xf   :  { %138 = vmatpush1.bf16.msra.mxu0 %v261_v8 }
  0x10   :  { %139 = vmatprep.subr.bf16.mxu0 %v262_v9 }
  0x13   :  { %140 = vmatpush1.bf16.msra.mxu0 %v264_v10 }
  0x14   :  { %141 = vmatprep.subr.bf16.mxu0 %v265_v11 }
  0x17   :  { %142 = vmatpush1.bf16.msra.mxu0 %v267_v12 }
  0x18   :  { %143 = vmatprep.subr.bf16.mxu0 %v268_v13 }
  0x1b   :  { %144 = vmatpush1.bf16.msra.mxu0 %v270_v14 }
  0x1c   :  { %145 = vmatprep.subr.bf16.mxu0 %v271_v15 }
  0x1f   :  { %146 = vmatpush1.bf16.msra.mxu0 %v273_v16 }
  0x22   :  { %164 = vmatmul.mubr.bf16.vlgmr.msra.gmra.mrb[0].mxu0 %v274_v17 }
  0xf5   :  { %v165_v25 = vpop.f32.mrb[0].mxu0 }
  0xf6   :  { %v166_v26 = vadd.f32 %v165_v25, %v38_v23  ;;  %v167_v27 = vpop.f32.mrb[1].mxu0 }
  0xf7   :  { %v168_v28 = vadd.f32 %v167_v27, %v42_v24  ;;  %v169_v29 = vpop.f32.mrb[2].mxu0 }
  0xf8   :  { %v178_v30 = vmul.f32 0.044715, %v166_v26  ;;  %v170_v31 = vadd.f32 %v169_v29, %v38_v23  ;;  %v171_v32 = vpop.f32.mrb[3].mxu0  ;;  %v174_v55 = vmul.f32 0.5, %v166_v26 }
  0xf9   :  { %v179_v33 = vmul.f32 0.044715, %v168_v28  ;;  %v172_v34 = vadd.f32 %v171_v32, %v42_v24  ;;  %v175_v58 = vmul.f32 0.5, %v168_v28 }
  0xfa   :  { %v182_v35 = vmul.f32 %v178_v30, %v166_v26  ;;  %v180_v36 = vmul.f32 0.044715, %v170_v31  ;;  %v176_v62 = vmul.f32 0.5, %v170_v31 }
  0xfb   :  { %v183_v37 = vmul.f32 %v179_v33, %v168_v28  ;;  %v181_v38 = vmul.f32 0.044715, %v172_v34  ;;  %v177_v1 = vmul.f32 0.5, %v172_v34 }
  0xfc   :  { %v186_v39 = vmul.f32 %v182_v35, %v166_v26  ;;  %v184_v40 = vmul.f32 %v180_v36, %v170_v31 }
  0xfd   :  { %v187_v41 = vmul.f32 %v183_v37, %v168_v28  ;;  %v185_v42 = vmul.f32 %v181_v38, %v172_v34 }
  0xfe   :  { %v190_v43 = vadd.f32 %v186_v39, %v166_v26  ;;  %v188_v44 = vmul.f32 %v184_v40, %v170_v31 }
  0xff   :  { %v191_v45 = vadd.f32 %v187_v41, %v168_v28  ;;  %v189_v46 = vmul.f32 %v185_v42, %v172_v34 }
 0x100   :  { %v194_v47 = vmul.f32 0.7978846, %v190_v43  ;;  %v192_v48 = vadd.f32 %v188_v44, %v170_v31 }
 0x101   :  { %v195_v49 = vmul.f32 0.7978846, %v191_v45  ;;  %v193_v50 = vadd.f32 %v189_v46, %v172_v34 }
 0x102   :  { %275 = vtanh.f32 %v194_v47  ;;  %v196_v51 = vmul.f32 0.7978846, %v192_v48 }
 0x103   :  { %277 = vtanh.f32 %v195_v49  ;;  %v197_v52 = vmul.f32 0.7978846, %v193_v50 }
 0x104   :  { %279 = vtanh.f32 %v196_v51 }
 0x105   :  { %281 = vtanh.f32 %v197_v52 }
 0x10c   :  { %v276_v53 = vpop.eup %275 }
 0x10d   :  { %v278_v54 = vpop.eup %277  ;;  %v202_v56 = vadd.f32 1.0, %v276_v53 }
 0x10e   :  { %v280_v57 = vpop.eup %279  ;;  %v203_v59 = vadd.f32 1.0, %v278_v54 }
 0x10f   :  { %v282_v60 = vpop.eup %281  ;;  %v206_v61 = vmul.f32 %v202_v56, %v174_v55  ;;  %v204_v63 = vadd.f32 1.0, %v280_v57 }
 0x110   :  { %v207_v0 = vmul.f32 %v203_v59, %v175_v58  ;;  %v205_v2 = vadd.f32 1.0, %v282_v60 }
 0x111   :  { %v208_v3 = vmul.f32 %v204_v63, %v176_v62 }
 0x112   :  { %v247_v4 = vpack.c.bf16 %v207_v0, %v206_v61  ;;  %v209_v5 = vmul.f32 %v205_v2, %v177_v1 }
 0x114   :  { %222 = vst [vmem:[%s367_s3] sm:$0xff] %v247_v4  ;;  %v248_v6 = vpack.c.bf16 %v209_v5, %v208_v3 }
 0x116   :  { %223 = vst [vmem:[%s367_s3 + $0x8] sm:$0xff] %v248_v6 }

// kernel: rc_model_forward.20
= control target key start
LH: loop header
LB: loop body
LE: loop exit
PB: predicated region body
PF: predicated region fallthrough
CT: control target
= control target key end

     0   :  { %v228_v0 = vmov 0.0   ;;  %vm229_vm0 = vmmov 0   ;;  %vm139_vm1 = vcmask 1041408   ;;  %s307_s1 = inlined_call_operand.vmem [shape: bf16[128,128], index: 1, kind: input, shape index: {}]   ;;  %s308_s0 = inlined_call_operand.vmem [shape: bf16[2,128], index: 0, kind: input, shape index: {}]   ;;  %s309_s3 = inlined_call_operand.vmem [shape: bf16[2,128], index: 3, kind: input, shape index: {}]   ;;  %s310_s2 = inlined_call_operand.vmem [shape: f32[1,128], index: 2, kind: input, shape index: {}]   ;;  %s311_s4 = inlined_call_operand.vmem [shape: f32[1,128], index: 4, kind: input, shape index: {}]   ;;  %s312_s5 = inlined_call_operand.vmem [shape: f32[1,128], index: 5, kind: input, shape index: {}]   ;;  %s313_s6 = inlined_call_operand.vmem [shape: bf16[2,128], index: 6, kind: output, shape index: {}]  }
   0x1   :  { %196 = vmatprep.subr.bf16.mxu0 %v228_v0  ;;  %v218_v1 = vld [vmem:[%s307_s1] sm:$0xff]   ;;  %212 = vmatprep.mubr.msk.bf16.mxu0 %vm229_vm0, %v228_v0  ;;  %v219_v2 = vld [vmem:[%s307_s1 + $0x8] sm:$0xff]   ;;  %v220_v3 = vld [vmem:[%s307_s1 + $0x10] sm:$0xff]  }
   0x2   :  { %197 = vmatpush3.bf16.msra.mxu0 %v218_v1  ;;  %v221_v4 = vld [vmem:[%s307_s1 + $0x18] sm:$0xff]   ;;  %v222_v5 = vld [vmem:[%s307_s1 + $0x20] sm:$0xff]   ;;  %v223_v6 = vld [vmem:[%s307_s1 + $0x28] sm:$0xff]  }
   0x3   :  { %198 = vmatprep.subr.bf16.mxu0 %v228_v0  ;;  %v224_v7 = vld [vmem:[%s307_s1 + $0x30] sm:$0xff]   ;;  %v225_v8 = vld [vmem:[%s307_s1 + $0x38] sm:$0xff]   ;;  %v24_v9 = vld [vmem:[%s308_s0] sm:$0x1] }
   0x4   :  { %v136_v10 = vld [vmem:[%s309_s3] sm:$0x1] }
   0x5   :  { %v176_v11 = vld [vmem:[%s310_s2] ss:$0 sm:$0xff]  ;;  %v137_v12 = vunpack.c.l.bf16 %v136_v10 }
   0x6   :  { %199 = vmatpush3.bf16.msra.mxu0 %v219_v2  ;;  %v185_v29 = vld [vmem:[%s311_s4] ss:$0 sm:$0xff] }
   0x7   :  { %200 = vmatprep.subr.bf16.mxu0 %v228_v0  ;;  %v186_v31 = vld [vmem:[%s312_s5] ss:$0 sm:$0xff] }
   0xa   :  { %201 = vmatpush3.bf16.msra.mxu0 %v220_v3 }
   0xb   :  { %202 = vmatprep.subr.bf16.mxu0 %v228_v0 }
   0xe   :  { %203 = vmatpush3.bf16.msra.mxu0 %v221_v4 }
   0xf   :  { %204 = vmatprep.subr.bf16.mxu0 %v228_v0 }
  0x12   :  { %205 = vmatpush3.bf16.msra.mxu0 %v222_v5 }
  0x13   :  { %206 = vmatprep.subr.bf16.mxu0 %v228_v0 }
  0x16   :  { %207 = vmatpush3.bf16.msra.mxu0 %v223_v6 }
  0x17   :  { %208 = vmatprep.subr.bf16.mxu0 %v228_v0 }
  0x1a   :  { %209 = vmatpush3.bf16.msra.mxu0 %v224_v7 }
  0x1b   :  { %210 = vmatprep.subr.bf16.mxu0 %v228_v0 }
  0x1e   :  { %211 = vmatpush3.bf16.msra.mxu0 %v225_v8 }
  0x21   :  { %213 = vmatmul.mubr.bf16.vlgmr.msra.gmra.mrb[0].mxu0 %v24_v9 }
  0xf4   :  { %v130_v13 = vpop.f32.mrb[0].mxu0 }
  0xf5   :  { %v131_v14 = vadd.f32 %v176_v11, %v130_v13  ;;  %v214_v15 = vpop.f32.mrb[1].mxu0 }
  0xf6   :  { %v133_v16 = vpop.f32.mrb[2].mxu0 }
  0xf7   :  { %v215_v17 = vpop.f32.mrb[3].mxu0  ;;  %v138_v18 = vadd.f32 %v137_v12, %v131_v14 }
  0xf9   :  { %v140_v19 = vsel %vm139_vm1, %v138_v18, 0.0 }
  0xfa   :  { %141 = vadd.xlane.f32.xlu0 %v140_v19 }
 0x187   :  { %v142_v20 = vpop.xlane.xlu0 %141 }
 0x188   :  { %v144_v21 = vmul.f32 0.0078125, %v142_v20 }
 0x18a   :  { %v145_v22 = vsub.f32 %v138_v18, %v144_v21 }
 0x18c   :  { %v146_v23 = vmul.f32 %v145_v22, %v145_v22 }
 0x18e   :  { %v147_v24 = vsel %vm139_vm1, %v146_v23, 0.0 }
 0x18f   :  { %148 = vadd.xlane.f32.xlu0 %v147_v24 }
 0x21c   :  { %v149_v25 = vpop.xlane.xlu0 %148 }
 0x21d   :  { %v150_v26 = vmul.f32 0.0078125, %v149_v25 }
 0x21f   :  { %v151_v27 = vadd.f32 1e-12, %v150_v26 }
 0x221   :  { %226 = vrsqrt.f32 %v151_v27 }
 0x22b   :  { %v227_v28 = vpop.eup %226 }
 0x22c   :  { %v153_v30 = vmul.f32 %v227_v28, %v145_v22 }
 0x22e   :  { %v161_v32 = vmul.f32 %v185_v29, %v153_v30 }
 0x230   :  { %v169_v33 = vadd.f32 %v186_v31, %v161_v32 }
 0x232   :  { %v170_v34 = vpack.c.bf16 %v169_v33, %v169_v33 }
 0x234   :  { %171 = vst [vmem:[%s313_s6] sm:$0x1] %v170_v34 }

// kernel: rc_model_forward.21
= control target key start
LH: loop header
LB: loop body
LE: loop exit
PB: predicated region body
PF: predicated region fallthrough
CT: control target
= control target key end

     0   :  { %v256_v1 = vmov 0   ;;  %v34_v18 = vlaneseq  ;;  %v257_v41 = vmov 1966171168   ;;  %s335_s1 = inlined_call_operand.vmem [shape: bf16[128,256], index: 1, kind: input, shape index: {}]   ;;  %s336_s0 = inlined_call_operand.vmem [shape: bf16[2,128], index: 0, kind: input, shape index: {}]   ;;  %s337_s2 = inlined_call_operand.vmem [shape: f32[1,256], index: 2, kind: input, shape index: {}]   ;;  %s338_s3 = inlined_call_operand.vmem [shape: bf16[2,256], index: 3, kind: output, shape index: {}]  }
   0x1   :  { %v228_v0 = vld [vmem:[%s335_s1 + $0x4] ss:$8 sps:$4 sm:$0xff]   ;;  %156 = vmatprep.mubr.bf16.mxu0 %v256_v1  ;;  %v230_v2 = vld [vmem:[%s335_s1] ss:$8 sps:$4 sm:$0xff]   ;;  %v231_v3 = vld [vmem:[%s335_s1 + $0x14] ss:$8 sps:$4 sm:$0xff]   ;;  %v189_v42 = vunpack.c.l.s4 %v257_v41 }
   0x2   :  { %124 = vmatprep.subr.bf16.mxu0 %v228_v0  ;;  %v233_v4 = vld [vmem:[%s335_s1 + $0x10] ss:$8 sps:$4 sm:$0xff]   ;;  %v234_v5 = vld [vmem:[%s335_s1 + $0x24] ss:$8 sps:$4 sm:$0xff]   ;;  %v236_v6 = vld [vmem:[%s335_s1 + $0x20] ss:$8 sps:$4 sm:$0xff]  }
   0x3   :  { %125 = vmatpush1.bf16.msra.mxu0 %v230_v2  ;;  %v237_v7 = vld [vmem:[%s335_s1 + $0x34] ss:$8 sps:$4 sm:$0xff]   ;;  %v239_v8 = vld [vmem:[%s335_s1 + $0x30] ss:$8 sps:$4 sm:$0xff]   ;;  %v240_v9 = vld [vmem:[%s335_s1 + $0x44] ss:$8 sps:$4 sm:$0xff]   ;;  %v190_v44 = vunpack.c.0.s8 %v189_v42 }
   0x4   :  { %126 = vmatprep.subr.bf16.mxu0 %v231_v3  ;;  %v242_v10 = vld [vmem:[%s335_s1 + $0x40] ss:$8 sps:$4 sm:$0xff]   ;;  %v243_v11 = vld [vmem:[%s335_s1 + $0x54] ss:$8 sps:$4 sm:$0xff]   ;;  %v245_v12 = vld [vmem:[%s335_s1 + $0x50] ss:$8 sps:$4 sm:$0xff]  }
   0x5   :  { %v246_v13 = vld [vmem:[%s335_s1 + $0x64] ss:$8 sps:$4 sm:$0xff]   ;;  %v248_v14 = vld [vmem:[%s335_s1 + $0x60] ss:$8 sps:$4 sm:$0xff]   ;;  %v249_v15 = vld [vmem:[%s335_s1 + $0x74] ss:$8 sps:$4 sm:$0xff]  }
   0x6   :  { %v251_v16 = vld [vmem:[%s335_s1 + $0x70] ss:$8 sps:$4 sm:$0xff]   ;;  %v15_v17 = vld [vmem:[%s336_s0] sm:$0x1]  ;;  %v35_v19 = vshrl.u32 %v34_v18, 7 }
   0x7   :  { %127 = vmatpush1.bf16.msra.mxu0 %v233_v4  ;;  %v32_v21 = vld [vmem:[%s337_s2] sm:$0x3] }
   0x8   :  { %128 = vmatprep.subr.bf16.mxu0 %v234_v5  ;;  %v36_v20 = vsub.s32 0, %v35_v19  ;;  %v40_v22 = vsub.s32 1, %v35_v19  ;;  %v193_v51 = vsub.s32 %v190_v44, %v35_v19 }
   0xa   :  { %v37_v23 = vrot.slane %v32_v21, %v36_v20  ;;  %v41_v24 = vrot.slane %v32_v21, %v40_v22 }
   0xb   :  { %129 = vmatpush1.bf16.msra.mxu0 %v236_v6 }
   0xc   :  { %130 = vmatprep.subr.bf16.mxu0 %v237_v7 }
   0xf   :  { %131 = vmatpush1.bf16.msra.mxu0 %v239_v8 }
  0x10   :  { %132 = vmatprep.subr.bf16.mxu0 %v240_v9 }
  0x13   :  { %133 = vmatpush1.bf16.msra.mxu0 %v242_v10 }
  0x14   :  { %134 = vmatprep.subr.bf16.mxu0 %v243_v11 }
  0x17   :  { %135 = vmatpush1.bf16.msra.mxu0 %v245_v12 }
  0x18   :  { %136 = vmatprep.subr.bf16.mxu0 %v246_v13 }
  0x1b   :  { %137 = vmatpush1.bf16.msra.mxu0 %v248_v14 }
  0x1c   :  { %138 = vmatprep.subr.bf16.mxu0 %v249_v15 }
  0x1f   :  { %139 = vmatpush1.bf16.msra.mxu0 %v251_v16 }
  0x22   :  { %157 = vmatmul.mubr.bf16.vlgmr.msra.gmra.mrb[0].mxu0 %v15_v17 }
  0xf5   :  { %v158_v25 = vpop.f32.mrb[0].mxu0 }
  0xf6   :  { %v159_v26 = vadd.f32 %v158_v25, %v37_v23  ;;  %v160_v27 = vpop.f32.mrb[1].mxu0 }
  0xf7   :  { %v161_v28 = vadd.f32 %v160_v27, %v41_v24  ;;  %v162_v29 = vpop.f32.mrb[2].mxu0 }
  0xf8   :  { %v167_v30 = vmul.f32 0.044715, %v159_v26  ;;  %v163_v31 = vpop.f32.mrb[3].mxu0  ;;  %v165_v46 = vmul.f32 0.5, %v159_v26 }
  0xf9   :  { %v168_v32 = vmul.f32 0.044715, %v161_v28  ;;  %v166_v48 = vmul.f32 0.5, %v161_v28 }
  0xfa   :  { %v169_v33 = vmul.f32 %v167_v30, %v159_v26 }
  0xfb   :  { %v170_v34 = vmul.f32 %v168_v32, %v161_v28 }
  0xfc   :  { %v171_v35 = vmul.f32 %v169_v33, %v159_v26 }
  0xfd   :  { %v172_v36 = vmul.f32 %v170_v34, %v161_v28 }
  0xfe   :  { %v173_v37 = vadd.f32 %v171_v35, %v159_v26 }
  0xff   :  { %v174_v38 = vadd.f32 %v172_v36, %v161_v28 }
 0x100   :  { %v175_v39 = vmul.f32 0.7978846, %v173_v37 }
 0x101   :  { %v176_v40 = vmul.f32 0.7978846, %v174_v38 }
 0x102   :  { %252 = vtanh.f32 %v175_v39 }
 0x103   :  { %254 = vtanh.f32 %v176_v40 }
 0x10c   :  { %v253_v43 = vpop.eup %252 }
 0x10d   :  { %v255_v45 = vpop.eup %254  ;;  %v179_v47 = vadd.f32 1.0, %v253_v43 }
 0x10e   :  { %v180_v49 = vadd.f32 1.0, %v255_v45 }
 0x10f   :  { %v181_v50 = vmul.f32 %v179_v47, %v165_v46 }
 0x110   :  { %v182_v52 = vmul.f32 %v180_v49, %v166_v48 }
 0x112   :  { %v224_v53 = vpack.c.bf16 %v182_v52, %v181_v50 }
 0x114   :  { %v194_v54 = vrot.slane %v224_v53, %v193_v51 }
 0x116   :  { %225 = vst.sshfl [vmem:[%s338_s3] sm:$0x5 pattern:$0x73625140] %v194_v54 }

// kernel: rc_model_forward.17
= control target key start
LH: loop header
LB: loop body
LE: loop exit
PB: predicated region body
PF: predicated region fallthrough
CT: control target
= control target key end

     0   :  { %s456_s1 = inlined_call_operand.vmem [shape: bf16[256,128], index: 1, kind: input, shape index: {}]   ;;  %s457_s0 = inlined_call_operand.vmem [shape: bf16[16,256], index: 0, kind: input, shape index: {}]   ;;  %s458_s3 = inlined_call_operand.vmem [shape: bf16[16,128], index: 3, kind: input, shape index: {}]   ;;  %s459_s2 = inlined_call_operand.vmem [shape: f32[1,128], index: 2, kind: input, shape index: {}]   ;;  %s460_s4 = inlined_call_operand.vmem [shape: f32[1,128], index: 4, kind: input, shape index: {}]   ;;  %s461_s5 = inlined_call_operand.vmem [shape: f32[1,128], index: 5, kind: input, shape index: {}]   ;;  %s462_s6 = inlined_call_operand.vmem [shape: bf16[16,128], index: 6, kind: output, shape index: {}]  }
   0x1   :  { %v329_v0 = vld [vmem:[%s456_s1 + $0x40] sm:$0xff]   ;;  %v331_v2 = vld [vmem:[%s456_s1 + $0x48] sm:$0xff]   ;;  %v333_v4 = vld [vmem:[%s456_s1 + $0x50] sm:$0xff]  }
   0x2   :  { %v330_v1 = vld [vmem:[%s456_s1] sm:$0xff]   ;;  %307 = vmatprep.subr.bf16.mxu0 %v329_v0  ;;  %v332_v3 = vld [vmem:[%s456_s1 + $0x8] sm:$0xff]   ;;  %v334_v5 = vld [vmem:[%s456_s1 + $0x10] sm:$0xff]  }
   0x3   :  { %308 = vmatpush3.bf16.msra.mxu0 %v330_v1  ;;  %v335_v6 = vld [vmem:[%s456_s1 + $0x58] sm:$0xff]   ;;  %v337_v8 = vld [vmem:[%s456_s1 + $0x60] sm:$0xff]   ;;  %v339_v10 = vld [vmem:[%s456_s1 + $0x68] sm:$0xff]  }
   0x4   :  { %309 = vmatprep.subr.bf16.mxu0 %v331_v2  ;;  %v336_v7 = vld [vmem:[%s456_s1 + $0x18] sm:$0xff]   ;;  %v338_v9 = vld [vmem:[%s456_s1 + $0x20] sm:$0xff]   ;;  %v340_v12 = vld [vmem:[%s456_s1 + $0x28] sm:$0xff]  }
   0x5   :  { %v347_v11 = vld [vmem:[%s457_s0 + $0x4] ss:$8 sps:$4 sm:$0xff]   ;;  %v341_v13 = vld [vmem:[%s456_s1 + $0x70] sm:$0xff]   ;;  %v343_v15 = vld [vmem:[%s456_s1 + $0x78] sm:$0xff]  }
   0x6   :  { %203 = vmatprep.mubr.bf16.mxu0 %v347_v11  ;;  %v342_v14 = vld [vmem:[%s456_s1 + $0x30] sm:$0xff]   ;;  %v344_v16 = vld [vmem:[%s456_s1 + $0x38] sm:$0xff]   ;;  %v345_v17 = vld [vmem:[%s457_s0] ss:$8 sps:$4 sm:$0xff]  }
   0x7   :  { %310 = vmatpush3.bf16.msra.mxu0 %v332_v3  ;;  %v299_v18 = vld [vmem:[%s458_s3] sm:$0xff]  }
   0x8   :  { %311 = vmatprep.subr.bf16.mxu0 %v333_v4  ;;  %v273_v20 = vld [vmem:[%s459_s2] ss:$0 sm:$0xff]  ;;  %v300_v24 = vunpack.c.l.bf16 %v299_v18  ;;  %v301_v30 = vunpack.c.h.bf16 %v299_v18 }
   0x9   :  { %v292_v48 = vld [vmem:[%s460_s4] ss:$0 sm:$0xff] }
   0xa   :  { %v293_v52 = vld [vmem:[%s461_s5] ss:$0 sm:$0xff] }
   0xb   :  { %312 = vmatpush3.bf16.msra.mxu0 %v334_v5 }
   0xc   :  { %313 = vmatprep.subr.bf16.mxu0 %v335_v6 }
   0xf   :  { %314 = vmatpush3.bf16.msra.mxu0 %v336_v7 }
  0x10   :  { %315 = vmatprep.subr.bf16.mxu0 %v337_v8 }
  0x13   :  { %316 = vmatpush3.bf16.msra.mxu0 %v338_v9 }
  0x14   :  { %317 = vmatprep.subr.bf16.mxu0 %v339_v10 }
  0x17   :  { %318 = vmatpush3.bf16.msra.mxu0 %v340_v12 }
  0x18   :  { %319 = vmatprep.subr.bf16.mxu0 %v341_v13 }
  0x1b   :  { %320 = vmatpush3.bf16.msra.mxu0 %v342_v14 }
  0x1c   :  { %321 = vmatprep.subr.bf16.mxu0 %v343_v15 }
  0x1f   :  { %322 = vmatpush3.bf16.msra.mxu0 %v344_v16 }
  0x22   :  { %204 = vmatmul.mubr.bf16.vlgmr.msra.gmra.mrb[0].mxu0 %v345_v17 }
  0xf5   :  { %v323_v19 = vpop.f32.mrb[0].mxu0 }
  0xf6   :  { %v324_v21 = vpop.f32.mrb[1].mxu0 }
  0xf7   :  { %v325_v22 = vadd.f32 %v324_v21, %v323_v19  ;;  %v326_v23 = vpop.f32.mrb[2].mxu0 }
  0xf8   :  { %v327_v25 = vpop.f32.mrb[3].mxu0 }
  0xf9   :  { %v206_v26 = vadd.f32 %v325_v22, %v273_v20  ;;  %v328_v27 = vadd.f32 %v327_v25, %v326_v23 }
  0xfb   :  { %v209_v28 = vadd.f32 %v328_v27, %v273_v20  ;;  %v216_v29 = vadd.f32 %v300_v24, %v206_v26 }
  0xfd   :  { %218 = vadd.xlane.f32.xlu0 %v216_v29  ;;  %v217_v31 = vadd.f32 %v301_v30, %v209_v28 }
 0x101   :  { %220 = vadd.xlane.f32.xlu0 %v217_v31 }
 0x18a   :  { %v219_v32 = vpop.xlane.xlu0 %218 }
 0x18b   :  { %v223_v33 = vmul.f32 0.0078125, %v219_v32 }
 0x18d   :  { %v225_v34 = vsub.f32 %v216_v29, %v223_v33 }
 0x18e   :  { %v221_v35 = vpop.xlane.xlu0 %220 }
 0x18f   :  { %v224_v36 = vmul.f32 0.0078125, %v221_v35  ;;  %v227_v37 = vmul.f32 %v225_v34, %v225_v34 }
 0x191   :  { %v226_v38 = vsub.f32 %v217_v31, %v224_v36  ;;  %229 = vadd.xlane.f32.xlu1 %v227_v37 }
 0x193   :  { %v228_v39 = vmul.f32 %v226_v38, %v226_v38 }
 0x195   :  { %231 = vadd.xlane.f32.xlu1 %v228_v39 }
 0x21e   :  { %v230_v40 = vpop.xlane.xlu1 %229 }
 0x21f   :  { %v233_v41 = vmul.f32 0.0078125, %v230_v40 }
 0x221   :  { %v235_v42 = vadd.f32 1e-12, %v233_v41 }
 0x222   :  { %v232_v43 = vpop.xlane.xlu1 %231 }
 0x223   :  { %348 = vrsqrt.f32 %v235_v42  ;;  %v234_v44 = vmul.f32 0.0078125, %v232_v43 }
 0x225   :  { %v236_v45 = vadd.f32 1e-12, %v234_v44 }
 0x227   :  { %350 = vrsqrt.f32 %v236_v45 }
 0x22d   :  { %v349_v46 = vpop.eup %348 }
 0x22e   :  { %v239_v47 = vmul.f32 %v349_v46, %v225_v34 }
 0x230   :  { %v248_v50 = vmul.f32 %v292_v48, %v239_v47 }
 0x231   :  { %v351_v49 = vpop.eup %350 }
 0x232   :  { %v240_v51 = vmul.f32 %v351_v49, %v226_v38  ;;  %v257_v54 = vadd.f32 %v293_v52, %v248_v50 }
 0x234   :  { %v249_v53 = vmul.f32 %v292_v48, %v240_v51 }
 0x236   :  { %v258_v55 = vadd.f32 %v293_v52, %v249_v53 }
 0x238   :  { %v305_v56 = vpack.c.bf16 %v258_v55, %v257_v54 }
 0x23a   :  { %306 = vst [vmem:[%s462_s6] sm:$0xff] %v305_v56  }

// kernel: rc_model_forward.22
= control target key start
LH: loop header
LB: loop body
LE: loop exit
PB: predicated region body
PF: predicated region fallthrough
CT: control target
= control target key end

     0   :  { %v326_v6 = vmov 1966171168   ;;  %v76_v8 = vlaneseq  ;;  %vm228_vm0 = vcmask 1041408   ;;  %s428_s1 = inlined_call_operand.vmem [shape: bf16[256,128], index: 1, kind: input, shape index: {}]   ;;  %s429_s0 = inlined_call_operand.vmem [shape: bf16[2,256], index: 0, kind: input, shape index: {}]   ;;  %s430_s3 = inlined_call_operand.vmem [shape: bf16[2,128], index: 3, kind: input, shape index: {}]   ;;  %s431_s2 = inlined_call_operand.vmem [shape: f32[1,128], index: 2, kind: input, shape index: {}]   ;;  %s432_s4 = inlined_call_operand.vmem [shape: f32[1,128], index: 4, kind: input, shape index: {}]   ;;  %s433_s5 = inlined_call_operand.vmem [shape: f32[1,128], index: 5, kind: input, shape index: {}]   ;;  %s434_s6 = inlined_call_operand.vmem [shape: bf16[2,128], index: 6, kind: output, shape index: {}]  }
   0x1   :  { %v308_v0 = vld [vmem:[%s428_s1 + $0x40] sm:$0xff]   ;;  %v310_v2 = vld [vmem:[%s428_s1 + $0x48] sm:$0xff]   ;;  %v312_v4 = vld [vmem:[%s428_s1 + $0x50] sm:$0xff]   ;;  %v74_v7 = vunpack.c.l.s4 %v326_v6 }
   0x2   :  { %v309_v1 = vld [vmem:[%s428_s1] sm:$0xff]   ;;  %285 = vmatprep.subr.bf16.mxu0 %v308_v0  ;;  %v311_v3 = vld [vmem:[%s428_s1 + $0x8] sm:$0xff]   ;;  %v313_v5 = vld [vmem:[%s428_s1 + $0x10] sm:$0xff]   ;;  %v77_v12 = vshrl.u32 %v76_v8, 7 }
   0x3   :  { %286 = vmatpush3.bf16.msra.mxu0 %v309_v1  ;;  %v314_v9 = vld [vmem:[%s428_s1 + $0x58] sm:$0xff]   ;;  %v75_v11 = vunpack.c.0.s8 %v74_v7  ;;  %v316_v13 = vld [vmem:[%s428_s1 + $0x60] sm:$0xff]   ;;  %v318_v16 = vld [vmem:[%s428_s1 + $0x68] sm:$0xff]  }
   0x4   :  { %287 = vmatprep.subr.bf16.mxu0 %v310_v2  ;;  %v315_v10 = vld [vmem:[%s428_s1 + $0x18] sm:$0xff]   ;;  %v317_v14 = vld [vmem:[%s428_s1 + $0x20] sm:$0xff]   ;;  %v319_v19 = vld [vmem:[%s428_s1 + $0x28] sm:$0xff]  }
   0x5   :  { %v78_v15 = vsub.s32 %v75_v11, %v77_v12  ;;  %v266_v17 = vld.sshfl [vmem:[%s429_s0] sm:$0x11 pattern:$0x75316420]  ;;  %v320_v21 = vld [vmem:[%s428_s1 + $0x70] sm:$0xff]   ;;  %v322_v23 = vld [vmem:[%s428_s1 + $0x78] sm:$0xff]  }
   0x6   :  { %v72_v18 = vcombine.high %v266_v17, %v266_v17  ;;  %v321_v22 = vld [vmem:[%s428_s1 + $0x30] sm:$0xff]   ;;  %v323_v24 = vld [vmem:[%s428_s1 + $0x38] sm:$0xff]   ;;  %v225_v26 = vld [vmem:[%s430_s3] sm:$0x1] }
   0x7   :  { %288 = vmatpush3.bf16.msra.mxu0 %v311_v3  ;;  %v79_v25 = vrot.slane %v266_v17, %v78_v15  ;;  %v265_v28 = vld [vmem:[%s431_s2] ss:$0 sm:$0xff]  ;;  %v226_v32 = vunpack.c.l.bf16 %v225_v26 }
   0x8   :  { %289 = vmatprep.subr.bf16.mxu0 %v312_v4  ;;  %v86_v20 = vrot.slane %v72_v18, %v78_v15  ;;  %v283_v46 = vld [vmem:[%s432_s4] ss:$0 sm:$0xff] }
   0x9   :  { %v284_v48 = vld [vmem:[%s433_s5] ss:$0 sm:$0xff] }
   0xa   :  { %217 = vmatprep.mubr.bf16.mxu0 %v86_v20 }
   0xb   :  { %290 = vmatpush3.bf16.msra.mxu0 %v313_v5 }
   0xc   :  { %291 = vmatprep.subr.bf16.mxu0 %v314_v9 }
   0xf   :  { %292 = vmatpush3.bf16.msra.mxu0 %v315_v10 }
  0x10   :  { %293 = vmatprep.subr.bf16.mxu0 %v316_v13 }
  0x13   :  { %294 = vmatpush3.bf16.msra.mxu0 %v317_v14 }
  0x14   :  { %295 = vmatprep.subr.bf16.mxu0 %v318_v16 }
  0x17   :  { %296 = vmatpush3.bf16.msra.mxu0 %v319_v19 }
  0x18   :  { %297 = vmatprep.subr.bf16.mxu0 %v320_v21 }
  0x1b   :  { %298 = vmatpush3.bf16.msra.mxu0 %v321_v22 }
  0x1c   :  { %299 = vmatprep.subr.bf16.mxu0 %v322_v23 }
  0x1f   :  { %300 = vmatpush3.bf16.msra.mxu0 %v323_v24 }
  0x22   :  { %218 = vmatmul.mubr.bf16.vlgmr.msra.gmra.mrb[0].mxu0 %v79_v25 }
  0xf5   :  { %v301_v27 = vpop.f32.mrb[0].mxu0 }
  0xf6   :  { %v302_v29 = vpop.f32.mrb[1].mxu0 }
  0xf7   :  { %v303_v30 = vadd.f32 %v302_v29, %v301_v27  ;;  %v304_v31 = vpop.f32.mrb[2].mxu0 }
  0xf8   :  { %v305_v33 = vpop.f32.mrb[3].mxu0 }
  0xf9   :  { %v220_v34 = vadd.f32 %v303_v30, %v265_v28 }
  0xfb   :  { %v227_v35 = vadd.f32 %v226_v32, %v220_v34 }
  0xfd   :  { %v229_v36 = vsel %vm228_vm0, %v227_v35, 0.0 }
  0xfe   :  { %230 = vadd.xlane.f32.xlu0 %v229_v36 }
 0x18b   :  { %v231_v37 = vpop.xlane.xlu0 %230 }
 0x18c   :  { %v233_v38 = vmul.f32 0.0078125, %v231_v37 }
 0x18e   :  { %v234_v39 = vsub.f32 %v227_v35, %v233_v38 }
 0x190   :  { %v235_v40 = vmul.f32 %v234_v39, %v234_v39 }
 0x192   :  { %v236_v41 = vsel %vm228_vm0, %v235_v40, 0.0 }
 0x193   :  { %237 = vadd.xlane.f32.xlu0 %v236_v41 }
 0x220   :  { %v238_v42 = vpop.xlane.xlu0 %237 }
 0x221   :  { %v239_v43 = vmul.f32 0.0078125, %v238_v42 }
 0x223   :  { %v240_v44 = vadd.f32 1e-12, %v239_v43 }
 0x225   :  { %324 = vrsqrt.f32 %v240_v44 }
 0x22f   :  { %v325_v45 = vpop.eup %324 }
 0x230   :  { %v242_v47 = vmul.f32 %v325_v45, %v234_v39 }
 0x232   :  { %v250_v49 = vmul.f32 %v283_v46, %v242_v47 }
 0x234   :  { %v258_v50 = vadd.f32 %v284_v48, %v250_v49 }
 0x236   :  { %v259_v51 = vpack.c.bf16 %v258_v50, %v258_v50 }
 0x238   :  { %260 = vst [vmem:[%s434_s6] sm:$0x1] %v259_v51 }

// kernel: rc_model_forward.23
= control target key start
LH: loop header
LB: loop body
LE: loop exit
PB: predicated region body
PF: predicated region fallthrough
CT: control target
= control target key end

     0   :  { %v226_v1 = vmov 0.0   ;;  %vm227_vm0 = vmmov 0   ;;  %s291_s0 = inlined_call_operand.vmem [shape: bf16[2,128], index: 0, kind: input, shape index: {}]   ;;  %s292_s1 = inlined_call_operand.vmem [shape: bf16[128,128], index: 1, kind: input, shape index: {}]   ;;  %s293_s2 = inlined_call_operand.vmem [shape: f32[1,128], index: 2, kind: input, shape index: {}]   ;;  %s294_s3 = inlined_call_operand.hbm [shape: f32[2,128], index: 3, kind: output, shape index: {}]  }
   0x1   :  { %v190_v0 = vld [vmem:[%s292_s1] sm:$0xff]   ;;  %167 = vmatprep.subr.bf16.mxu0 %v226_v1  ;;  %v191_v2 = vld [vmem:[%s292_s1 + $0x8] sm:$0xff]   ;;  %183 = vmatprep.mubr.msk.bf16.mxu0 %vm227_vm0, %v226_v1  ;;  %v192_v3 = vld [vmem:[%s292_s1 + $0x10] sm:$0xff]  }
   0x2   :  { %168 = vmatpush3.bf16.msra.mxu0 %v190_v0 }
   0x3   :  { %169 = vmatprep.subr.bf16.mxu0 %v226_v1 }
   0x6   :  { %170 = vmatpush3.bf16.msra.mxu0 %v191_v2 }
   0x7   :  { %171 = vmatprep.subr.bf16.mxu0 %v226_v1 }
   0x8   :  { %8 = vsyncpa [#allocation3], 0  ;;  %v193_v4 = vld [vmem:[%s292_s1 + $0x18] sm:$0xff]   ;;  %v194_v5 = vld [vmem:[%s292_s1 + $0x20] sm:$0xff]  }
   0x9   :  { %v195_v6 = vld [vmem:[%s292_s1 + $0x28] sm:$0xff]   ;;  %v196_v7 = vld [vmem:[%s292_s1 + $0x30] sm:$0xff]   ;;  %v197_v8 = vld [vmem:[%s292_s1 + $0x38] sm:$0xff]   ;;  %s228_s1 = smov [#allocation2]  }
   0xa   :  { %172 = vmatpush3.bf16.msra.mxu0 %v192_v3  ;;  %v16_v9 = vld [vmem:[%s291_s0] sm:$0x1]  ;;  %s141_s5 = sshll.u32 %s228_s1, 4  ;;  %s142_s5 = int_to_ptr.vmem [resolvable:$true] %s141_s5 }
   0xb   :  { %173 = vmatprep.subr.bf16.mxu0 %v226_v1  ;;  %v149_v10 = vld [vmem:[%s293_s2] ss:$0 sm:$0xff]  ;;  %s202_s0 = scalar_lea.vmem %s142_s5, 32  ;;  %p207_p1 = scmp.lt.s32.totalorder %s142_s5, %s142_s5 }
   0xc   :  { %p203_p0 = scmp.ne.s32.totalorder %s142_s5, %s202_s0  ;;  %p208_p2 = scmp.lt.s32.totalorder %s202_s0, %s202_s0 }
   0xe   :  { %174 = vmatpush3.bf16.msra.mxu0 %v193_v4  ;;  %p209_p3 = por %p208_p2, %p207_p1 }
   0xf   :  { %175 = vmatprep.subr.bf16.mxu0 %v226_v1 }
  0x10   :  { %p210_p4 = pnand %p209_p3, %p203_p0 }
  0x12   :  { %176 = vmatpush3.bf16.msra.mxu0 %v194_v5 }
  0x13   :  { %177 = vmatprep.subr.bf16.mxu0 %v226_v1 }
  0x16   :  { %178 = vmatpush3.bf16.msra.mxu0 %v195_v6 }
  0x17   :  { %179 = vmatprep.subr.bf16.mxu0 %v226_v1 }
  0x1a   :  { %180 = vmatpush3.bf16.msra.mxu0 %v196_v7 }
  0x1b   :  { %181 = vmatprep.subr.bf16.mxu0 %v226_v1 }
  0x1e   :  { %182 = vmatpush3.bf16.msra.mxu0 %v197_v8 }
  0x21   :  { %184 = vmatmul.mubr.bf16.vlgmr.msra.gmra.mrb[0].mxu0 %v16_v9 }
  0xf4   :  { %v122_v11 = vpop.f32.mrb[0].mxu0 }
  0xf5   :  { %v123_v12 = vadd.f32 %v149_v10, %v122_v11  ;;  %v185_v13 = vpop.f32.mrb[1].mxu0 }
  0xf6   :  { %v125_v14 = vpop.f32.mrb[2].mxu0 }
  0xf7   :  { %v128_v15 = vsub.f32 0.0, %v123_v12  ;;  %v186_v16 = vpop.f32.mrb[3].mxu0 }
  0xf9   :  { %v129_v17 = vmul.f32 1.442695, %v128_v15 }
  0xfb   :  { %198 = vpow2.f32 %v129_v17 }
 0x105   :  { %v199_v18 = vpop.eup %198 }
 0x106   :  { %v131_v19 = vadd.f32 1.0, %v199_v18 }
 0x108   :  { %200 = vrcp.f32 %v131_v19 }
 0x112   :  { %v201_v20 = vpop.eup %200 }
 0x113   :  { %134 = vst [vmem:[#allocation2] sm:$0x3] %v201_v20 }
 0x114   :  { %213 = shalt.err (!%p210_p4)
}
 0x115   :  { %s214_s7 = scalar_lea.hbm %s294_s3, 32 }
 0x116   :  { %p215_p5 = scmp.ne.s32.totalorder %s294_s3, %s214_s7  ;;  %p218_p6 = scmp.lt.u32.totalorder %s214_s7, %s294_s3 }
 0x118   :  { %p220_p7 = pnand %p218_p6, %p215_p5 }
 0x11a   :  { %223 = shalt.err (!%p220_p7)
}
 0x11b   :  { %144 = dma.vmem_to_hbm [thread:$0]  %s142_s5, 32, %s294_s3, [#allocation3]  }
 0x11c   :  { %224 = dma.done.wait [#allocation3], 32  }
 0x11d   :  { %225 = vsyncadd [#allocation3], 4294967264 }
 0x11e   :  { %148 = vsyncpa [#allocation3], 1 }

</bundles_post_ra>
